<compile_context>
chip_gen: v7x
topology: tpu7x:2x2x1
jax: 0.10.0
libtpu: 0.0.40
codegen_flags: <defaults>
</compile_context>

<pallas_src>
from functools import partial

import jax
import jax.numpy as jnp
import numpy as np
from jax.experimental import pallas as pl
from jax.experimental.pallas import tpu as pltpu

PAD_token = 1
LANE = 128
SUBLANE = 8


def _round_up(x, m):
    return ((x + m - 1) // m) * m


# ----------------------------------------------------------------------------- kernel
def decoder_kernel(pcount_ref, emb_ref, a_hbm_in, h0_ref, c0_ref, wih_ref, whh_ref, b_ref,
                   outs_ref, hT_ref, cT_ref, a_hbm_out,
                   a_vmem, xw_scr, dma_sem, *, B, B_pad, S):
    Hp = h0_ref.shape[-1]                                # padded hidden (multiple of 128)
    Pcap = a_vmem.shape[0]                               # memory-matrix capacity rows
    p_live = pcount_ref[0]                               # live rows of A

    # ---- stage the whole memory matrix A into VMEM (needed immediately) ---------
    load_A = pltpu.make_async_copy(a_hbm_in, a_vmem, dma_sem.at[0])
    load_A.start()
    load_A.wait()

    # ---- attention over the memory matrix A (softmax over the sequence axis) ----
    emb = emb_ref[...]                                   # (S*B_pad, Hp) f32, time-major rows
    A_bf = a_vmem[...].astype(jnp.bfloat16)              # bf16 MXU operand, f32 accumulate
    scores = jax.lax.dot_general(
        emb.astype(jnp.bfloat16), A_bf, (((1,), (1,)), ((), ())),
        preferred_element_type=jnp.float32)              # (S*B_pad, Pcap)
    s3 = scores.reshape(S, B_pad, Pcap)
    m = jnp.max(s3, axis=0, keepdims=True)
    e = jnp.exp(s3 - m)
    denom = jnp.sum(e, axis=0, keepdims=True)
    attw = e * pl.reciprocal(denom, approx=True)         # (S, B_pad, Pcap)
    # Mask dead memory slots (p >= p_live).  Exact no-op while dead rows stay zero, but makes
    # the capacity buffer robust against stale data.
    slot = jax.lax.broadcasted_iota(jnp.int32, (S, B_pad, Pcap), 2)
    attw = jnp.where(slot < p_live, attw, 0.0)
    att = jax.lax.dot_general(
        attw.reshape(S * B_pad, Pcap).astype(jnp.bfloat16), A_bf,
        (((1,), (0,)), ((), ())),
        preferred_element_type=jnp.float32)              # (S*B_pad, Hp)
    x = emb + att                                        # f32

    # ---- hoisted input projection (sequence independent), parked in VMEM --------
    xw = jnp.dot(x.astype(jnp.bfloat16), wih_ref[...],
                 preferred_element_type=jnp.float32) + b_ref[...]     # (S*B_pad, 4Hp)
    xw_scr[...] = xw.reshape(S, B_pad, 4 * Hp)           # time-major, re-read per step

    # ---- LSTM recurrence (PyTorch gate order i, f, g, o), statically unrolled ----
    h = h0_ref[...]                                      # (B_pad, Hp) f32
    c = c0_ref[...]
    rows = []
    base = 0
    for t in range(S):                                   # S is static -> full unroll
        # read W_hh at the dot site each step (keeps vreg pressure flat under the unroll)
        gates = xw_scr[t] + jnp.dot(h.astype(jnp.bfloat16), whh_ref[...],
                                    preferred_element_type=jnp.float32)  # (B_pad, 4Hp)
        i_g = jax.nn.sigmoid(gates[:, 0:Hp])             # lane-aligned 128-wide slices
        f_g = jax.nn.sigmoid(gates[:, Hp:2 * Hp])
        g_g = jnp.tanh(gates[:, 2 * Hp:3 * Hp])
        o_g = jax.nn.sigmoid(gates[:, 3 * Hp:4 * Hp])
        c = f_g * c + i_g * g_g
        h = o_g * jnp.tanh(c)
        rows.append(h[0:1, :])                           # mirrors self.outputs[ptr] = o[0][0]
        if len(rows) == SUBLANE or t == S - 1:           # stream out one sublane tile at a time
            while len(rows) < SUBLANE:
                rows.append(jnp.zeros((1, Hp), jnp.float32))
            outs_ref[base:base + SUBLANE, :] = jnp.concatenate(rows, axis=0)
            base += SUBLANE
            rows = []

    hT_ref[...] = h
    cT_ref[...] = c

    # ---- in-place append of the B valid final hidden rows into A (O(B*H) HBM write) ----
    append = pltpu.make_async_copy(hT_ref.at[pl.ds(0, B)],
                                   a_hbm_out.at[pl.ds(p_live, B)],
                                   dma_sem.at[1])
    append.start()
    append.wait()


# ----------------------------------------------------------------------------- param prep
def prepare_params(emb_table, W_ih, W_hh, b_ih, b_hh):
    """Pad H to a multiple of 128, pre-transpose gate weights to (Hp, 4Hp), cast weights to bf16."""
    V, H = emb_table.shape
    Hp = _round_up(H, LANE)

    emb_p = jnp.pad(jnp.asarray(emb_table, jnp.float32), ((0, 0), (0, Hp - H)))

    wih = np.zeros((Hp, 4 * Hp), np.float32)
    whh = np.zeros((Hp, 4 * Hp), np.float32)
    bias = np.zeros((1, 4 * Hp), np.float32)
    W_ih = np.asarray(W_ih, np.float32)
    W_hh = np.asarray(W_hh, np.float32)
    b = np.asarray(b_ih, np.float32) + np.asarray(b_hh, np.float32)
    for k in range(4):                                   # keep i|f|g|o blocks at k*Hp offsets
        wih[:H, k * Hp:k * Hp + H] = W_ih[k * H:(k + 1) * H, :].T
        whh[:H, k * Hp:k * Hp + H] = W_hh[k * H:(k + 1) * H, :].T
        bias[0, k * Hp:k * Hp + H] = b[k * H:(k + 1) * H]
    return (emb_p,
            jnp.asarray(wih, jnp.bfloat16),
            jnp.asarray(whh, jnp.bfloat16),
            jnp.asarray(bias, jnp.float32))


def init_memory(H, capacity=128):
    """Pre-allocated memory matrix A (row 0 mirrors the zeros(1, H) init, so 1 live row)."""
    Hp = _round_up(H, LANE)
    return jnp.zeros((capacity, Hp), jnp.float32), jnp.asarray(1, jnp.int32)


# ----------------------------------------------------------------------------- wrapper
def decoder_forward(sent, h, c, A_buf, p_count, params):
    """One Decoder.forward call.

    sent: int32 (B, S); h, c: float32 (1, B, H); A_buf: float32 (Pcap, Hp) capacity buffer whose
    rows >= p_count are zero; p_count: int32 scalar live-row count.
    Returns (h, c), the S per-step batch-0 hidden states, the (aliased) updated A buffer with
    h appended at rows [p_count, p_count+B), and the new live-row count.
    """
    emb_p, wih_bf, whh_bf, bias_p = params
    Hp = emb_p.shape[1]
    B, S = sent.shape
    H = h.shape[-1]
    B_pad = _round_up(B, SUBLANE)
    Sp = _round_up(S, SUBLANE)
    Pcap = A_buf.shape[0]

    # Glue done in XLA: embedding gather (time-major row order s*B_pad + b) + state padding.
    sent_p = jnp.pad(sent, ((0, B_pad - B), (0, 0)), constant_values=PAD_token)
    emb = jnp.take(emb_p, jnp.transpose(sent_p).reshape(-1), axis=0)      # (S*B_pad, Hp)
    h0 = jnp.zeros((B_pad, Hp), jnp.float32).at[:B, :H].set(h[0])
    c0 = jnp.zeros((B_pad, Hp), jnp.float32).at[:B, :H].set(c[0])
    pcnt = jnp.asarray(p_count, jnp.int32).reshape((1,))

    vmem = pl.BlockSpec(memory_space=pltpu.MemorySpace.VMEM)
    smem = pl.BlockSpec(memory_space=pltpu.MemorySpace.SMEM)
    anyspc = pl.BlockSpec(memory_space=pl.ANY)

    outs, hT, cT, A_new = pl.pallas_call(
        partial(decoder_kernel, B=B, B_pad=B_pad, S=S),
        out_shape=(
            jax.ShapeDtypeStruct((Sp, Hp), jnp.float32),     # per-step batch-0 hidden states
            jax.ShapeDtypeStruct((B_pad, Hp), jnp.float32),  # final h
            jax.ShapeDtypeStruct((B_pad, Hp), jnp.float32),  # final c
            jax.ShapeDtypeStruct((Pcap, Hp), jnp.float32),   # A (aliased, appended in place)
        ),
        in_specs=[smem, vmem, anyspc, vmem, vmem, vmem, vmem, vmem],
        out_specs=(vmem, vmem, vmem, anyspc),
        scratch_shapes=[
            pltpu.VMEM((Pcap, Hp), jnp.float32),             # A staged for the attention dots
            pltpu.VMEM((S, B_pad, 4 * Hp), jnp.float32),     # hoisted input projection
            pltpu.SemaphoreType.DMA((2,)),
        ],
        input_output_aliases={2: 3},                          # in-place append into A_buf
        compiler_params=pltpu.CompilerParams(vmem_limit_bytes=32 * 1024 * 1024),
    )(pcnt, emb, A_buf, h0, c0, wih_bf, whh_bf, bias_p)

    hT = hT[:B, :H]
    cT = cT[:B, :H]
    stored_outputs = outs[:S, :H]                             # self.outputs[ptr] = o[0][0] per step
    return (hT[None], cT[None]), stored_outputs, A_new, p_count + B


# ----------------------------------------------------------------------------- reference
def reference_forward(emb, A, h0, c0, wih_T, whh_T, bias):
    H = h0.shape[-1]
    scores = jnp.einsum('bsh,ph->bsp', emb, A)
    attw = jax.nn.softmax(scores, axis=1)
    att = jnp.einsum('bsp,ph->bsh', attw, A)
    x = emb + att
    xs = jnp.transpose(x, (1, 0, 2))

    def step(carry, x_t):
        h, c = carry
        g = x_t @ wih_T + h @ whh_T + bias
        i = jax.nn.sigmoid(g[:, 0:H])
        f = jax.nn.sigmoid(g[:, H:2 * H])
        gg = jnp.tanh(g[:, 2 * H:3 * H])
        o = jax.nn.sigmoid(g[:, 3 * H:4 * H])
        c2 = f * c + i * gg
        h2 = o * jnp.tanh(c2)
        return (h2, c2), h2

    (hT, cT), outs = jax.lax.scan(step, (h0, c0), xs)
    return outs, hT, cT


# ----------------------------------------------------------------------------- main
if __name__ == "__main__":
    B, S, H, V, P = 2, 8, 32, 50, 3      # batch, seq, hidden(=embedding_dim), vocab, live rows of A
    Pcap = 128                           # memory-matrix capacity (rows)

    key = jax.random.PRNGKey(0)
    k_emb, k_A, k_wih, k_whh, k_bih, k_bhh, k_sent, k_h, k_c = jax.random.split(key, 9)

    # Embedding table (padding_idx row zeroed, as nn.Embedding does)
    emb_table = 0.1 * jax.random.normal(k_emb, (V, H), dtype=jnp.float32)
    emb_table = emb_table.at[PAD_token].set(0.0)

    # Memory matrix A: row 0 mirrors the zeros(1, H) init; extra rows simulate prior calls.
    A = 0.5 * jax.random.normal(k_A, (P, H), dtype=jnp.float32)
    A = A.at[0].set(0.0)

    # LSTM parameters (PyTorch uniform(-1/sqrt(H), 1/sqrt(H)) init)
    kscale = 1.0 / np.sqrt(H)
    W_ih = jax.random.uniform(k_wih, (4 * H, H), jnp.float32, -kscale, kscale)
    W_hh = jax.random.uniform(k_whh, (4 * H, H), jnp.float32, -kscale, kscale)
    b_ih = jax.random.uniform(k_bih, (4 * H,), jnp.float32, -kscale, kscale)
    b_hh = jax.random.uniform(k_bhh, (4 * H,), jnp.float32, -kscale, kscale)

    # Inputs
    sent = jax.random.randint(k_sent, (B, S), 0, V, dtype=jnp.int32)
    h0 = 0.1 * jax.random.normal(k_h, (1, B, H), dtype=jnp.float32)
    c0 = 0.1 * jax.random.normal(k_c, (1, B, H), dtype=jnp.float32)

    params = prepare_params(emb_table, W_ih, W_hh, b_ih, b_hh)
    Hp = params[0].shape[1]

    # Pre-allocated memory matrix with capacity; rows [0, P) live, rest exactly zero.
    A_buf = jnp.zeros((Pcap, Hp), jnp.float32).at[:P, :H].set(A)
    p_count = jnp.asarray(P, jnp.int32)

    fwd = jax.jit(decoder_forward, donate_argnums=(3,))   # A_buf is updated in place
    (hT, cT), stored_outputs, A_new, p_new = fwd(sent, h0, c0, A_buf, p_count, params)
    jax.block_until_ready((hT, cT, stored_outputs, A_new, p_new))

    # Pure-JAX f32 reference (original semantics, unpadded)
    emb = jnp.take(emb_table, sent, axis=0).astype(jnp.float32)
    bias = (b_ih + b_hh).reshape(1, 4 * H)
    ref_outs, ref_hT, ref_cT = reference_forward(emb, A, h0[0], c0[0], W_ih.T, W_hh.T, bias)

    # bf16 MXU operands (f32 accumulate / elementwise) -> 5e-3 tolerance vs f32 reference.
    TOL = dict(rtol=5e-3, atol=5e-3)
    assert np.allclose(np.asarray(hT[0]), np.asarray(ref_hT), **TOL)
    assert np.allclose(np.asarray(cT[0]), np.asarray(ref_cT), **TOL)
    assert np.allclose(np.asarray(stored_outputs), np.asarray(ref_outs[:, 0, :]), **TOL)

    # In-place append checks: old rows untouched, new rows == h, capacity rows still zero.
    A_new_np = np.asarray(A_new)
    assert np.array_equal(A_new_np[:P, :H], np.asarray(A))
    assert np.allclose(A_new_np[P:P + B, :H], np.asarray(hT[0]), atol=1e-6)
    assert not A_new_np[P + B:].any()
    assert int(p_new) == P + B

    print("KERNEL_OK")
</pallas_src>

<mosaic_0001>
module attributes {stable_mosaic.version = 11 : i64} {
  func.func @decoder_kernel(%arg0: memref<1xi32, #tpu.memory_space<smem>>, %arg1: memref<64x128xf32, #tpu.memory_space<vmem>>, %arg2: memref<128x128xf32, #tpu.memory_space<any>>, %arg3: memref<8x128xf32, #tpu.memory_space<vmem>>, %arg4: memref<8x128xf32, #tpu.memory_space<vmem>>, %arg5: memref<128x512xbf16, #tpu.memory_space<vmem>>, %arg6: memref<128x512xbf16, #tpu.memory_space<vmem>>, %arg7: memref<1x512xf32, #tpu.memory_space<vmem>>, %arg8: memref<8x128xf32, #tpu.memory_space<vmem>>, %arg9: memref<8x128xf32, #tpu.memory_space<vmem>>, %arg10: memref<8x128xf32, #tpu.memory_space<vmem>>, %arg11: memref<128x128xf32, #tpu.memory_space<any>>, %arg12: memref<128x128xf32, #tpu.memory_space<vmem>>, %arg13: memref<8x8x512xf32, #tpu.memory_space<vmem>>, %arg14: memref<2x!tpu.dma_semaphore, #tpu.memory_space<semaphore_mem>>) attributes {dimension_semantics = [], scalar_prefetch = 0 : i64, scratch_operands = 3 : i64, tpu.core_type = #tpu.core_type<tc>} {
    %c0 = arith.constant 0 : index
    %0 = memref.load %arg0[%c0] : memref<1xi32, #tpu.memory_space<smem>>
    %c0_i32 = arith.constant 0 : i32
    %1 = tpu.memref_slice %arg14[%c0_i32] : memref<2x!tpu.dma_semaphore, #tpu.memory_space<semaphore_mem>> -> memref<1x!tpu.dma_semaphore, #tpu.memory_space<semaphore_mem>>
    %2 = tpu.memref_squeeze %1 : memref<1x!tpu.dma_semaphore, #tpu.memory_space<semaphore_mem>> -> memref<!tpu.dma_semaphore, #tpu.memory_space<semaphore_mem>>
    tpu.enqueue_dma source(%arg2 : memref<128x128xf32, #tpu.memory_space<any>>) target(%arg12 : memref<128x128xf32, #tpu.memory_space<vmem>>) target_semaphore(%2 : memref<!tpu.dma_semaphore, #tpu.memory_space<semaphore_mem>>)
    %c0_i32_0 = arith.constant 0 : i32
    %3 = tpu.memref_slice %arg14[%c0_i32_0] : memref<2x!tpu.dma_semaphore, #tpu.memory_space<semaphore_mem>> -> memref<1x!tpu.dma_semaphore, #tpu.memory_space<semaphore_mem>>
    %4 = tpu.memref_squeeze %3 : memref<1x!tpu.dma_semaphore, #tpu.memory_space<semaphore_mem>> -> memref<!tpu.dma_semaphore, #tpu.memory_space<semaphore_mem>>
    tpu.wait_dma2 semaphore(%4 : memref<!tpu.dma_semaphore, #tpu.memory_space<semaphore_mem>>) src(%arg2 : memref<128x128xf32, #tpu.memory_space<any>>) dst(%arg12 : memref<128x128xf32, #tpu.memory_space<vmem>>)
    %c0_1 = arith.constant 0 : index
    %c0_2 = arith.constant 0 : index
    %5 = vector.load %arg1[%c0_1, %c0_2] : memref<64x128xf32, #tpu.memory_space<vmem>>, vector<64x128xf32>
    %c0_3 = arith.constant 0 : index
    %c0_4 = arith.constant 0 : index
    %6 = vector.load %arg12[%c0_3, %c0_4] : memref<128x128xf32, #tpu.memory_space<vmem>>, vector<128x128xf32>
    %7 = arith.truncf %6 : vector<128x128xf32> to vector<128x128xbf16>
    %8 = arith.truncf %5 : vector<64x128xf32> to vector<64x128xbf16>
    %cst = arith.constant dense<0.000000e+00> : vector<64x128xf32>
    %9 = tpu.matmul %8, %7, %cst {dimension_numbers = #tpu.dot_dimension_numbers<[1], [1], [0], [0], [0, 0, 1, 0], [], []>} : vector<64x128xbf16>, vector<128x128xbf16>, vector<64x128xf32> -> vector<64x128xf32>
    %10 = vector.shape_cast %9 : vector<64x128xf32> to vector<8x8x128xf32>
    %cst_5 = arith.constant dense<0xFF800000> : vector<8x128xf32>
    %11 = vector.multi_reduction <maximumf>, %10, %cst_5 [0] : vector<8x8x128xf32> to vector<8x128xf32>
    %12 = vector.shape_cast %11 : vector<8x128xf32> to vector<1x8x128xf32>
    %13 = vector.broadcast %12 : vector<1x8x128xf32> to vector<8x8x128xf32>
    %14 = arith.subf %10, %13 : vector<8x8x128xf32>
    %15 = math.exp %14 : vector<8x8x128xf32>
    %cst_6 = arith.constant dense<0.000000e+00> : vector<8x128xf32>
    %16 = vector.multi_reduction <add>, %15, %cst_6 [0] : vector<8x8x128xf32> to vector<8x128xf32>
    %17 = vector.shape_cast %16 : vector<8x128xf32> to vector<1x8x128xf32>
    %18 = tpu.reciprocal %17 {approx = true} : vector<1x8x128xf32> -> vector<1x8x128xf32>
    %19 = vector.broadcast %18 : vector<1x8x128xf32> to vector<8x8x128xf32>
    %20 = arith.mulf %15, %19 : vector<8x8x128xf32>
    %21 = tpu.iota {dimensions = array<i32: 2>} : vector<8x8x128xi32>
    %22 = vector.broadcast %0 : i32 to vector<8x8x128xi32>
    %23 = arith.cmpi slt, %21, %22 : vector<8x8x128xi32>
    %cst_7 = arith.constant 0.000000e+00 : f32
    %24 = vector.broadcast %cst_7 : f32 to vector<8x8x128xf32>
    %25 = arith.select %23, %20, %24 : vector<8x8x128xi1>, vector<8x8x128xf32>
    %26 = vector.shape_cast %25 : vector<8x8x128xf32> to vector<64x128xf32>
    %27 = arith.truncf %26 : vector<64x128xf32> to vector<64x128xbf16>
    %cst_8 = arith.constant dense<0.000000e+00> : vector<64x128xf32>
    %28 = tpu.matmul %27, %7, %cst_8 {dimension_numbers = #tpu.dot_dimension_numbers<[1], [0], [0], [1], [0, 0, 1, 1], [], []>} : vector<64x128xbf16>, vector<128x128xbf16>, vector<64x128xf32> -> vector<64x128xf32>
    %29 = arith.addf %5, %28 : vector<64x128xf32>
    %30 = arith.truncf %29 : vector<64x128xf32> to vector<64x128xbf16>
    %c0_9 = arith.constant 0 : index
    %c0_10 = arith.constant 0 : index
    %31 = vector.load %arg5[%c0_9, %c0_10] : memref<128x512xbf16, #tpu.memory_space<vmem>>, vector<128x512xbf16>
    %cst_11 = arith.constant dense<0.000000e+00> : vector<64x512xf32>
    %32 = tpu.matmul %30, %31, %cst_11 {dimension_numbers = #tpu.dot_dimension_numbers<[1], [0], [0], [1], [0, 0, 1, 1], [], []>} : vector<64x128xbf16>, vector<128x512xbf16>, vector<64x512xf32> -> vector<64x512xf32>
    %c0_12 = arith.constant 0 : index
    %c0_13 = arith.constant 0 : index
    %33 = vector.load %arg7[%c0_12, %c0_13] : memref<1x512xf32, #tpu.memory_space<vmem>>, vector<1x512xf32>
    %34 = vector.broadcast %33 : vector<1x512xf32> to vector<64x512xf32>
    %35 = arith.addf %32, %34 : vector<64x512xf32>
    %36 = vector.shape_cast %35 : vector<64x512xf32> to vector<8x8x512xf32>
    %c0_14 = arith.constant 0 : index
    %c0_15 = arith.constant 0 : index
    %c0_16 = arith.constant 0 : index
    %37 = vector.load %arg13[%c0_14, %c0_15, %c0_16] : memref<8x8x512xf32, #tpu.memory_space<vmem>>, vector<8x8x512xf32>
    tpu.vector_store %arg13[%c0_14, %c0_15, %c0_16], %36 {strides = array<i32>} : memref<8x8x512xf32, #tpu.memory_space<vmem>>, vector<8x8x512xf32>,
    %c0_17 = arith.constant 0 : index
    %c0_18 = arith.constant 0 : index
    %38 = vector.load %arg3[%c0_17, %c0_18] : memref<8x128xf32, #tpu.memory_space<vmem>>, vector<8x128xf32>
    %c0_19 = arith.constant 0 : index
    %c0_20 = arith.constant 0 : index
    %39 = vector.load %arg4[%c0_19, %c0_20] : memref<8x128xf32, #tpu.memory_space<vmem>>, vector<8x128xf32>
    %c0_21 = arith.constant 0 : index
    %c0_22 = arith.constant 0 : index
    %c0_23 = arith.constant 0 : index
    %40 = vector.load %arg13[%c0_21, %c0_22, %c0_23] : memref<8x8x512xf32, #tpu.memory_space<vmem>>, vector<1x8x512xf32>
    %41 = vector.shape_cast %40 : vector<1x8x512xf32> to vector<8x512xf32>
    %42 = arith.truncf %38 : vector<8x128xf32> to vector<8x128xbf16>
    %c0_24 = arith.constant 0 : index
    %c0_25 = arith.constant 0 : index
    %43 = vector.load %arg6[%c0_24, %c0_25] : memref<128x512xbf16, #tpu.memory_space<vmem>>, vector<128x512xbf16>
    %cst_26 = arith.constant dense<0.000000e+00> : vector<8x512xf32>
    %44 = tpu.matmul %42, %43, %cst_26 {dimension_numbers = #tpu.dot_dimension_numbers<[1], [0], [0], [1], [0, 0, 1, 1], [], []>} : vector<8x128xbf16>, vector<128x512xbf16>, vector<8x512xf32> -> vector<8x512xf32>
    %45 = arith.addf %41, %44 : vector<8x512xf32>
    %46 = vector.extract_strided_slice %45 {offsets = [0, 0], sizes = [8, 128], strides = [1, 1]} : vector<8x512xf32> to vector<8x128xf32>
    %47 = arith.negf %46 : vector<8x128xf32>
    %48 = math.exp %47 : vector<8x128xf32>
    %cst_27 = arith.constant 1.000000e+00 : f32
    %49 = vector.broadcast %cst_27 : f32 to vector<8x128xf32>
    %50 = arith.addf %49, %48 : vector<8x128xf32>
    %51 = arith.divf %49, %50 : vector<8x128xf32>
    %52 = vector.extract_strided_slice %45 {offsets = [0, 128], sizes = [8, 128], strides = [1, 1]} : vector<8x512xf32> to vector<8x128xf32>
    %53 = arith.negf %52 : vector<8x128xf32>
    %54 = math.exp %53 : vector<8x128xf32>
    %cst_28 = arith.constant 1.000000e+00 : f32
    %55 = vector.broadcast %cst_28 : f32 to vector<8x128xf32>
    %56 = arith.addf %55, %54 : vector<8x128xf32>
    %57 = arith.divf %55, %56 : vector<8x128xf32>
    %58 = vector.extract_strided_slice %45 {offsets = [0, 256], sizes = [8, 128], strides = [1, 1]} : vector<8x512xf32> to vector<8x128xf32>
    %59 = math.tanh %58 : vector<8x128xf32>
    %60 = vector.extract_strided_slice %45 {offsets = [0, 384], sizes = [8, 128], strides = [1, 1]} : vector<8x512xf32> to vector<8x128xf32>
    %61 = arith.negf %60 : vector<8x128xf32>
    %62 = math.exp %61 : vector<8x128xf32>
    %cst_29 = arith.constant 1.000000e+00 : f32
    %63 = vector.broadcast %cst_29 : f32 to vector<8x128xf32>
    %64 = arith.addf %63, %62 : vector<8x128xf32>
    %65 = arith.divf %63, %64 : vector<8x128xf32>
    %66 = arith.mulf %57, %39 : vector<8x128xf32>
    %67 = arith.mulf %51, %59 : vector<8x128xf32>
    %68 = arith.addf %66, %67 : vector<8x128xf32>
    %69 = math.tanh %68 : vector<8x128xf32>
    %70 = arith.mulf %65, %69 : vector<8x128xf32>
    %71 = vector.extract_strided_slice %70 {offsets = [0, 0], sizes = [1, 128], strides = [1, 1]} : vector<8x128xf32> to vector<1x128xf32>
    %c1 = arith.constant 1 : index
    %c0_30 = arith.constant 0 : index
    %c0_31 = arith.constant 0 : index
    %72 = vector.load %arg13[%c1, %c0_30, %c0_31] : memref<8x8x512xf32, #tpu.memory_space<vmem>>, vector<1x8x512xf32>
    %73 = vector.shape_cast %72 : vector<1x8x512xf32> to vector<8x512xf32>
    %74 = arith.truncf %70 : vector<8x128xf32> to vector<8x128xbf16>
    %c0_32 = arith.constant 0 : index
    %c0_33 = arith.constant 0 : index
    %75 = vector.load %arg6[%c0_32, %c0_33] : memref<128x512xbf16, #tpu.memory_space<vmem>>, vector<128x512xbf16>
    %cst_34 = arith.constant dense<0.000000e+00> : vector<8x512xf32>
    %76 = tpu.matmul %74, %75, %cst_34 {dimension_numbers = #tpu.dot_dimension_numbers<[1], [0], [0], [1], [0, 0, 1, 1], [], []>} : vector<8x128xbf16>, vector<128x512xbf16>, vector<8x512xf32> -> vector<8x512xf32>
    %77 = arith.addf %73, %76 : vector<8x512xf32>
    %78 = vector.extract_strided_slice %77 {offsets = [0, 0], sizes = [8, 128], strides = [1, 1]} : vector<8x512xf32> to vector<8x128xf32>
    %79 = arith.negf %78 : vector<8x128xf32>
    %80 = math.exp %79 : vector<8x128xf32>
    %cst_35 = arith.constant 1.000000e+00 : f32
    %81 = vector.broadcast %cst_35 : f32 to vector<8x128xf32>
    %82 = arith.addf %81, %80 : vector<8x128xf32>
    %83 = arith.divf %81, %82 : vector<8x128xf32>
    %84 = vector.extract_strided_slice %77 {offsets = [0, 128], sizes = [8, 128], strides = [1, 1]} : vector<8x512xf32> to vector<8x128xf32>
    %85 = arith.negf %84 : vector<8x128xf32>
    %86 = math.exp %85 : vector<8x128xf32>
    %cst_36 = arith.constant 1.000000e+00 : f32
    %87 = vector.broadcast %cst_36 : f32 to vector<8x128xf32>
    %88 = arith.addf %87, %86 : vector<8x128xf32>
    %89 = arith.divf %87, %88 : vector<8x128xf32>
    %90 = vector.extract_strided_slice %77 {offsets = [0, 256], sizes = [8, 128], strides = [1, 1]} : vector<8x512xf32> to vector<8x128xf32>
    %91 = math.tanh %90 : vector<8x128xf32>
    %92 = vector.extract_strided_slice %77 {offsets = [0, 384], sizes = [8, 128], strides = [1, 1]} : vector<8x512xf32> to vector<8x128xf32>
    %93 = arith.negf %92 : vector<8x128xf32>
    %94 = math.exp %93 : vector<8x128xf32>
    %cst_37 = arith.constant 1.000000e+00 : f32
    %95 = vector.broadcast %cst_37 : f32 to vector<8x128xf32>
    %96 = arith.addf %95, %94 : vector<8x128xf32>
    %97 = arith.divf %95, %96 : vector<8x128xf32>
    %98 = arith.mulf %89, %68 : vector<8x128xf32>
    %99 = arith.mulf %83, %91 : vector<8x128xf32>
    %100 = arith.addf %98, %99 : vector<8x128xf32>
    %101 = math.tanh %100 : vector<8x128xf32>
    %102 = arith.mulf %97, %101 : vector<8x128xf32>
    %103 = vector.extract_strided_slice %102 {offsets = [0, 0], sizes = [1, 128], strides = [1, 1]} : vector<8x128xf32> to vector<1x128xf32>
    %c2 = arith.constant 2 : index
    %c0_38 = arith.constant 0 : index
    %c0_39 = arith.constant 0 : index
    %104 = vector.load %arg13[%c2, %c0_38, %c0_39] : memref<8x8x512xf32, #tpu.memory_space<vmem>>, vector<1x8x512xf32>
    %105 = vector.shape_cast %104 : vector<1x8x512xf32> to vector<8x512xf32>
    %106 = arith.truncf %102 : vector<8x128xf32> to vector<8x128xbf16>
    %c0_40 = arith.constant 0 : index
    %c0_41 = arith.constant 0 : index
    %107 = vector.load %arg6[%c0_40, %c0_41] : memref<128x512xbf16, #tpu.memory_space<vmem>>, vector<128x512xbf16>
    %cst_42 = arith.constant dense<0.000000e+00> : vector<8x512xf32>
    %108 = tpu.matmul %106, %107, %cst_42 {dimension_numbers = #tpu.dot_dimension_numbers<[1], [0], [0], [1], [0, 0, 1, 1], [], []>} : vector<8x128xbf16>, vector<128x512xbf16>, vector<8x512xf32> -> vector<8x512xf32>
    %109 = arith.addf %105, %108 : vector<8x512xf32>
    %110 = vector.extract_strided_slice %109 {offsets = [0, 0], sizes = [8, 128], strides = [1, 1]} : vector<8x512xf32> to vector<8x128xf32>
    %111 = arith.negf %110 : vector<8x128xf32>
    %112 = math.exp %111 : vector<8x128xf32>
    %cst_43 = arith.constant 1.000000e+00 : f32
    %113 = vector.broadcast %cst_43 : f32 to vector<8x128xf32>
    %114 = arith.addf %113, %112 : vector<8x128xf32>
    %115 = arith.divf %113, %114 : vector<8x128xf32>
    %116 = vector.extract_strided_slice %109 {offsets = [0, 128], sizes = [8, 128], strides = [1, 1]} : vector<8x512xf32> to vector<8x128xf32>
    %117 = arith.negf %116 : vector<8x128xf32>
    %118 = math.exp %117 : vector<8x128xf32>
    %cst_44 = arith.constant 1.000000e+00 : f32
    %119 = vector.broadcast %cst_44 : f32 to vector<8x128xf32>
    %120 = arith.addf %119, %118 : vector<8x128xf32>
    %121 = arith.divf %119, %120 : vector<8x128xf32>
    %122 = vector.extract_strided_slice %109 {offsets = [0, 256], sizes = [8, 128], strides = [1, 1]} : vector<8x512xf32> to vector<8x128xf32>
    %123 = math.tanh %122 : vector<8x128xf32>
    %124 = vector.extract_strided_slice %109 {offsets = [0, 384], sizes = [8, 128], strides = [1, 1]} : vector<8x512xf32> to vector<8x128xf32>
    %125 = arith.negf %124 : vector<8x128xf32>
    %126 = math.exp %125 : vector<8x128xf32>
    %cst_45 = arith.constant 1.000000e+00 : f32
    %127 = vector.broadcast %cst_45 : f32 to vector<8x128xf32>
    %128 = arith.addf %127, %126 : vector<8x128xf32>
    %129 = arith.divf %127, %128 : vector<8x128xf32>
    %130 = arith.mulf %121, %100 : vector<8x128xf32>
    %131 = arith.mulf %115, %123 : vector<8x128xf32>
    %132 = arith.addf %130, %131 : vector<8x128xf32>
    %133 = math.tanh %132 : vector<8x128xf32>
    %134 = arith.mulf %129, %133 : vector<8x128xf32>
    %135 = vector.extract_strided_slice %134 {offsets = [0, 0], sizes = [1, 128], strides = [1, 1]} : vector<8x128xf32> to vector<1x128xf32>
    %c3 = arith.constant 3 : index
    %c0_46 = arith.constant 0 : index
    %c0_47 = arith.constant 0 : index
    %136 = vector.load %arg13[%c3, %c0_46, %c0_47] : memref<8x8x512xf32, #tpu.memory_space<vmem>>, vector<1x8x512xf32>
    %137 = vector.shape_cast %136 : vector<1x8x512xf32> to vector<8x512xf32>
    %138 = arith.truncf %134 : vector<8x128xf32> to vector<8x128xbf16>
    %c0_48 = arith.constant 0 : index
    %c0_49 = arith.constant 0 : index
    %139 = vector.load %arg6[%c0_48, %c0_49] : memref<128x512xbf16, #tpu.memory_space<vmem>>, vector<128x512xbf16>
    %cst_50 = arith.constant dense<0.000000e+00> : vector<8x512xf32>
    %140 = tpu.matmul %138, %139, %cst_50 {dimension_numbers = #tpu.dot_dimension_numbers<[1], [0], [0], [1], [0, 0, 1, 1], [], []>} : vector<8x128xbf16>, vector<128x512xbf16>, vector<8x512xf32> -> vector<8x512xf32>
    %141 = arith.addf %137, %140 : vector<8x512xf32>
    %142 = vector.extract_strided_slice %141 {offsets = [0, 0], sizes = [8, 128], strides = [1, 1]} : vector<8x512xf32> to vector<8x128xf32>
    %143 = arith.negf %142 : vector<8x128xf32>
    %144 = math.exp %143 : vector<8x128xf32>
    %cst_51 = arith.constant 1.000000e+00 : f32
    %145 = vector.broadcast %cst_51 : f32 to vector<8x128xf32>
    %146 = arith.addf %145, %144 : vector<8x128xf32>
    %147 = arith.divf %145, %146 : vector<8x128xf32>
    %148 = vector.extract_strided_slice %141 {offsets = [0, 128], sizes = [8, 128], strides = [1, 1]} : vector<8x512xf32> to vector<8x128xf32>
    %149 = arith.negf %148 : vector<8x128xf32>
    %150 = math.exp %149 : vector<8x128xf32>
    %cst_52 = arith.constant 1.000000e+00 : f32
    %151 = vector.broadcast %cst_52 : f32 to vector<8x128xf32>
    %152 = arith.addf %151, %150 : vector<8x128xf32>
    %153 = arith.divf %151, %152 : vector<8x128xf32>
    %154 = vector.extract_strided_slice %141 {offsets = [0, 256], sizes = [8, 128], strides = [1, 1]} : vector<8x512xf32> to vector<8x128xf32>
    %155 = math.tanh %154 : vector<8x128xf32>
    %156 = vector.extract_strided_slice %141 {offsets = [0, 384], sizes = [8, 128], strides = [1, 1]} : vector<8x512xf32> to vector<8x128xf32>
    %157 = arith.negf %156 : vector<8x128xf32>
    %158 = math.exp %157 : vector<8x128xf32>
    %cst_53 = arith.constant 1.000000e+00 : f32
    %159 = vector.broadcast %cst_53 : f32 to vector<8x128xf32>
    %160 = arith.addf %159, %158 : vector<8x128xf32>
    %161 = arith.divf %159, %160 : vector<8x128xf32>
    %162 = arith.mulf %153, %132 : vector<8x128xf32>
    %163 = arith.mulf %147, %155 : vector<8x128xf32>
    %164 = arith.addf %162, %163 : vector<8x128xf32>
    %165 = math.tanh %164 : vector<8x128xf32>
    %166 = arith.mulf %161, %165 : vector<8x128xf32>
    %167 = vector.extract_strided_slice %166 {offsets = [0, 0], sizes = [1, 128], strides = [1, 1]} : vector<8x128xf32> to vector<1x128xf32>
    %c4 = arith.constant 4 : index
    %c0_54 = arith.constant 0 : index
    %c0_55 = arith.constant 0 : index
    %168 = vector.load %arg13[%c4, %c0_54, %c0_55] : memref<8x8x512xf32, #tpu.memory_space<vmem>>, vector<1x8x512xf32>
    %169 = vector.shape_cast %168 : vector<1x8x512xf32> to vector<8x512xf32>
    %170 = arith.truncf %166 : vector<8x128xf32> to vector<8x128xbf16>
    %c0_56 = arith.constant 0 : index
    %c0_57 = arith.constant 0 : index
    %171 = vector.load %arg6[%c0_56, %c0_57] : memref<128x512xbf16, #tpu.memory_space<vmem>>, vector<128x512xbf16>
    %cst_58 = arith.constant dense<0.000000e+00> : vector<8x512xf32>
    %172 = tpu.matmul %170, %171, %cst_58 {dimension_numbers = #tpu.dot_dimension_numbers<[1], [0], [0], [1], [0, 0, 1, 1], [], []>} : vector<8x128xbf16>, vector<128x512xbf16>, vector<8x512xf32> -> vector<8x512xf32>
    %173 = arith.addf %169, %172 : vector<8x512xf32>
    %174 = vector.extract_strided_slice %173 {offsets = [0, 0], sizes = [8, 128], strides = [1, 1]} : vector<8x512xf32> to vector<8x128xf32>
    %175 = arith.negf %174 : vector<8x128xf32>
    %176 = math.exp %175 : vector<8x128xf32>
    %cst_59 = arith.constant 1.000000e+00 : f32
    %177 = vector.broadcast %cst_59 : f32 to vector<8x128xf32>
    %178 = arith.addf %177, %176 : vector<8x128xf32>
    %179 = arith.divf %177, %178 : vector<8x128xf32>
    %180 = vector.extract_strided_slice %173 {offsets = [0, 128], sizes = [8, 128], strides = [1, 1]} : vector<8x512xf32> to vector<8x128xf32>
    %181 = arith.negf %180 : vector<8x128xf32>
    %182 = math.exp %181 : vector<8x128xf32>
    %cst_60 = arith.constant 1.000000e+00 : f32
    %183 = vector.broadcast %cst_60 : f32 to vector<8x128xf32>
    %184 = arith.addf %183, %182 : vector<8x128xf32>
    %185 = arith.divf %183, %184 : vector<8x128xf32>
    %186 = vector.extract_strided_slice %173 {offsets = [0, 256], sizes = [8, 128], strides = [1, 1]} : vector<8x512xf32> to vector<8x128xf32>
    %187 = math.tanh %186 : vector<8x128xf32>
    %188 = vector.extract_strided_slice %173 {offsets = [0, 384], sizes = [8, 128], strides = [1, 1]} : vector<8x512xf32> to vector<8x128xf32>
    %189 = arith.negf %188 : vector<8x128xf32>
    %190 = math.exp %189 : vector<8x128xf32>
    %cst_61 = arith.constant 1.000000e+00 : f32
    %191 = vector.broadcast %cst_61 : f32 to vector<8x128xf32>
    %192 = arith.addf %191, %190 : vector<8x128xf32>
    %193 = arith.divf %191, %192 : vector<8x128xf32>
    %194 = arith.mulf %185, %164 : vector<8x128xf32>
    %195 = arith.mulf %179, %187 : vector<8x128xf32>
    %196 = arith.addf %194, %195 : vector<8x128xf32>
    %197 = math.tanh %196 : vector<8x128xf32>
    %198 = arith.mulf %193, %197 : vector<8x128xf32>
    %199 = vector.extract_strided_slice %198 {offsets = [0, 0], sizes = [1, 128], strides = [1, 1]} : vector<8x128xf32> to vector<1x128xf32>
    %c5 = arith.constant 5 : index
    %c0_62 = arith.constant 0 : index
    %c0_63 = arith.constant 0 : index
    %200 = vector.load %arg13[%c5, %c0_62, %c0_63] : memref<8x8x512xf32, #tpu.memory_space<vmem>>, vector<1x8x512xf32>
    %201 = vector.shape_cast %200 : vector<1x8x512xf32> to vector<8x512xf32>
    %202 = arith.truncf %198 : vector<8x128xf32> to vector<8x128xbf16>
    %c0_64 = arith.constant 0 : index
    %c0_65 = arith.constant 0 : index
    %203 = vector.load %arg6[%c0_64, %c0_65] : memref<128x512xbf16, #tpu.memory_space<vmem>>, vector<128x512xbf16>
    %cst_66 = arith.constant dense<0.000000e+00> : vector<8x512xf32>
    %204 = tpu.matmul %202, %203, %cst_66 {dimension_numbers = #tpu.dot_dimension_numbers<[1], [0], [0], [1], [0, 0, 1, 1], [], []>} : vector<8x128xbf16>, vector<128x512xbf16>, vector<8x512xf32> -> vector<8x512xf32>
    %205 = arith.addf %201, %204 : vector<8x512xf32>
    %206 = vector.extract_strided_slice %205 {offsets = [0, 0], sizes = [8, 128], strides = [1, 1]} : vector<8x512xf32> to vector<8x128xf32>
    %207 = arith.negf %206 : vector<8x128xf32>
    %208 = math.exp %207 : vector<8x128xf32>
    %cst_67 = arith.constant 1.000000e+00 : f32
    %209 = vector.broadcast %cst_67 : f32 to vector<8x128xf32>
    %210 = arith.addf %209, %208 : vector<8x128xf32>
    %211 = arith.divf %209, %210 : vector<8x128xf32>
    %212 = vector.extract_strided_slice %205 {offsets = [0, 128], sizes = [8, 128], strides = [1, 1]} : vector<8x512xf32> to vector<8x128xf32>
    %213 = arith.negf %212 : vector<8x128xf32>
    %214 = math.exp %213 : vector<8x128xf32>
    %cst_68 = arith.constant 1.000000e+00 : f32
    %215 = vector.broadcast %cst_68 : f32 to vector<8x128xf32>
    %216 = arith.addf %215, %214 : vector<8x128xf32>
    %217 = arith.divf %215, %216 : vector<8x128xf32>
    %218 = vector.extract_strided_slice %205 {offsets = [0, 256], sizes = [8, 128], strides = [1, 1]} : vector<8x512xf32> to vector<8x128xf32>
    %219 = math.tanh %218 : vector<8x128xf32>
    %220 = vector.extract_strided_slice %205 {offsets = [0, 384], sizes = [8, 128], strides = [1, 1]} : vector<8x512xf32> to vector<8x128xf32>
    %221 = arith.negf %220 : vector<8x128xf32>
    %222 = math.exp %221 : vector<8x128xf32>
    %cst_69 = arith.constant 1.000000e+00 : f32
    %223 = vector.broadcast %cst_69 : f32 to vector<8x128xf32>
    %224 = arith.addf %223, %222 : vector<8x128xf32>
    %225 = arith.divf %223, %224 : vector<8x128xf32>
    %226 = arith.mulf %217, %196 : vector<8x128xf32>
    %227 = arith.mulf %211, %219 : vector<8x128xf32>
    %228 = arith.addf %226, %227 : vector<8x128xf32>
    %229 = math.tanh %228 : vector<8x128xf32>
    %230 = arith.mulf %225, %229 : vector<8x128xf32>
    %231 = vector.extract_strided_slice %230 {offsets = [0, 0], sizes = [1, 128], strides = [1, 1]} : vector<8x128xf32> to vector<1x128xf32>
    %c6 = arith.constant 6 : index
    %c0_70 = arith.constant 0 : index
    %c0_71 = arith.constant 0 : index
    %232 = vector.load %arg13[%c6, %c0_70, %c0_71] : memref<8x8x512xf32, #tpu.memory_space<vmem>>, vector<1x8x512xf32>
    %233 = vector.shape_cast %232 : vector<1x8x512xf32> to vector<8x512xf32>
    %234 = arith.truncf %230 : vector<8x128xf32> to vector<8x128xbf16>
    %c0_72 = arith.constant 0 : index
    %c0_73 = arith.constant 0 : index
    %235 = vector.load %arg6[%c0_72, %c0_73] : memref<128x512xbf16, #tpu.memory_space<vmem>>, vector<128x512xbf16>
    %cst_74 = arith.constant dense<0.000000e+00> : vector<8x512xf32>
    %236 = tpu.matmul %234, %235, %cst_74 {dimension_numbers = #tpu.dot_dimension_numbers<[1], [0], [0], [1], [0, 0, 1, 1], [], []>} : vector<8x128xbf16>, vector<128x512xbf16>, vector<8x512xf32> -> vector<8x512xf32>
    %237 = arith.addf %233, %236 : vector<8x512xf32>
    %238 = vector.extract_strided_slice %237 {offsets = [0, 0], sizes = [8, 128], strides = [1, 1]} : vector<8x512xf32> to vector<8x128xf32>
    %239 = arith.negf %238 : vector<8x128xf32>
    %240 = math.exp %239 : vector<8x128xf32>
    %cst_75 = arith.constant 1.000000e+00 : f32
    %241 = vector.broadcast %cst_75 : f32 to vector<8x128xf32>
    %242 = arith.addf %241, %240 : vector<8x128xf32>
    %243 = arith.divf %241, %242 : vector<8x128xf32>
    %244 = vector.extract_strided_slice %237 {offsets = [0, 128], sizes = [8, 128], strides = [1, 1]} : vector<8x512xf32> to vector<8x128xf32>
    %245 = arith.negf %244 : vector<8x128xf32>
    %246 = math.exp %245 : vector<8x128xf32>
    %cst_76 = arith.constant 1.000000e+00 : f32
    %247 = vector.broadcast %cst_76 : f32 to vector<8x128xf32>
    %248 = arith.addf %247, %246 : vector<8x128xf32>
    %249 = arith.divf %247, %248 : vector<8x128xf32>
    %250 = vector.extract_strided_slice %237 {offsets = [0, 256], sizes = [8, 128], strides = [1, 1]} : vector<8x512xf32> to vector<8x128xf32>
    %251 = math.tanh %250 : vector<8x128xf32>
    %252 = vector.extract_strided_slice %237 {offsets = [0, 384], sizes = [8, 128], strides = [1, 1]} : vector<8x512xf32> to vector<8x128xf32>
    %253 = arith.negf %252 : vector<8x128xf32>
    %254 = math.exp %253 : vector<8x128xf32>
    %cst_77 = arith.constant 1.000000e+00 : f32
    %255 = vector.broadcast %cst_77 : f32 to vector<8x128xf32>
    %256 = arith.addf %255, %254 : vector<8x128xf32>
    %257 = arith.divf %255, %256 : vector<8x128xf32>
    %258 = arith.mulf %249, %228 : vector<8x128xf32>
    %259 = arith.mulf %243, %251 : vector<8x128xf32>
    %260 = arith.addf %258, %259 : vector<8x128xf32>
    %261 = math.tanh %260 : vector<8x128xf32>
    %262 = arith.mulf %257, %261 : vector<8x128xf32>
    %263 = vector.extract_strided_slice %262 {offsets = [0, 0], sizes = [1, 128], strides = [1, 1]} : vector<8x128xf32> to vector<1x128xf32>
    %c7 = arith.constant 7 : index
    %c0_78 = arith.constant 0 : index
    %c0_79 = arith.constant 0 : index
    %264 = vector.load %arg13[%c7, %c0_78, %c0_79] : memref<8x8x512xf32, #tpu.memory_space<vmem>>, vector<1x8x512xf32>
    %265 = vector.shape_cast %264 : vector<1x8x512xf32> to vector<8x512xf32>
    %266 = arith.truncf %262 : vector<8x128xf32> to vector<8x128xbf16>
    %c0_80 = arith.constant 0 : index
    %c0_81 = arith.constant 0 : index
    %267 = vector.load %arg6[%c0_80, %c0_81] : memref<128x512xbf16, #tpu.memory_space<vmem>>, vector<128x512xbf16>
    %cst_82 = arith.constant dense<0.000000e+00> : vector<8x512xf32>
    %268 = tpu.matmul %266, %267, %cst_82 {dimension_numbers = #tpu.dot_dimension_numbers<[1], [0], [0], [1], [0, 0, 1, 1], [], []>} : vector<8x128xbf16>, vector<128x512xbf16>, vector<8x512xf32> -> vector<8x512xf32>
    %269 = arith.addf %265, %268 : vector<8x512xf32>
    %270 = vector.extract_strided_slice %269 {offsets = [0, 0], sizes = [8, 128], strides = [1, 1]} : vector<8x512xf32> to vector<8x128xf32>
    %271 = arith.negf %270 : vector<8x128xf32>
    %272 = math.exp %271 : vector<8x128xf32>
    %cst_83 = arith.constant 1.000000e+00 : f32
    %273 = vector.broadcast %cst_83 : f32 to vector<8x128xf32>
    %274 = arith.addf %273, %272 : vector<8x128xf32>
    %275 = arith.divf %273, %274 : vector<8x128xf32>
    %276 = vector.extract_strided_slice %269 {offsets = [0, 128], sizes = [8, 128], strides = [1, 1]} : vector<8x512xf32> to vector<8x128xf32>
    %277 = arith.negf %276 : vector<8x128xf32>
    %278 = math.exp %277 : vector<8x128xf32>
    %cst_84 = arith.constant 1.000000e+00 : f32
    %279 = vector.broadcast %cst_84 : f32 to vector<8x128xf32>
    %280 = arith.addf %279, %278 : vector<8x128xf32>
    %281 = arith.divf %279, %280 : vector<8x128xf32>
    %282 = vector.extract_strided_slice %269 {offsets = [0, 256], sizes = [8, 128], strides = [1, 1]} : vector<8x512xf32> to vector<8x128xf32>
    %283 = math.tanh %282 : vector<8x128xf32>
    %284 = vector.extract_strided_slice %269 {offsets = [0, 384], sizes = [8, 128], strides = [1, 1]} : vector<8x512xf32> to vector<8x128xf32>
    %285 = arith.negf %284 : vector<8x128xf32>
    %286 = math.exp %285 : vector<8x128xf32>
    %cst_85 = arith.constant 1.000000e+00 : f32
    %287 = vector.broadcast %cst_85 : f32 to vector<8x128xf32>
    %288 = arith.addf %287, %286 : vector<8x128xf32>
    %289 = arith.divf %287, %288 : vector<8x128xf32>
    %290 = arith.mulf %281, %260 : vector<8x128xf32>
    %291 = arith.mulf %275, %283 : vector<8x128xf32>
    %292 = arith.addf %290, %291 : vector<8x128xf32>
    %293 = math.tanh %292 : vector<8x128xf32>
    %294 = arith.mulf %289, %293 : vector<8x128xf32>
    %295 = vector.extract_strided_slice %294 {offsets = [0, 0], sizes = [1, 128], strides = [1, 1]} : vector<8x128xf32> to vector<1x128xf32>
    %296 = tpu.concatenate %71, %103, %135, %167, %199, %231, %263, %295 in 0 : vector<1x128xf32>, vector<1x128xf32>, vector<1x128xf32>, vector<1x128xf32>, vector<1x128xf32>, vector<1x128xf32>, vector<1x128xf32>, vector<1x128xf32> -> vector<8x128xf32>
    %c0_86 = arith.constant 0 : index
    %c0_87 = arith.constant 0 : index
    %297 = vector.load %arg8[%c0_86, %c0_87] : memref<8x128xf32, #tpu.memory_space<vmem>>, vector<8x128xf32>
    tpu.vector_store %arg8[%c0_86, %c0_87], %296 {strides = array<i32>} : memref<8x128xf32, #tpu.memory_space<vmem>>, vector<8x128xf32>,
    %c0_88 = arith.constant 0 : index
    %c0_89 = arith.constant 0 : index
    %298 = vector.load %arg9[%c0_88, %c0_89] : memref<8x128xf32, #tpu.memory_space<vmem>>, vector<8x128xf32>
    tpu.vector_store %arg9[%c0_88, %c0_89], %294 {strides = array<i32>} : memref<8x128xf32, #tpu.memory_space<vmem>>, vector<8x128xf32>,
    %c0_90 = arith.constant 0 : index
    %c0_91 = arith.constant 0 : index
    %299 = vector.load %arg10[%c0_90, %c0_91] : memref<8x128xf32, #tpu.memory_space<vmem>>, vector<8x128xf32>
    tpu.vector_store %arg10[%c0_90, %c0_91], %292 {strides = array<i32>} : memref<8x128xf32, #tpu.memory_space<vmem>>, vector<8x128xf32>,
    %c1_i32 = arith.constant 1 : i32
    %c0_i32_92 = arith.constant 0 : i32
    %c0_i32_93 = arith.constant 0 : i32
    %300 = tpu.memref_slice %arg9[%c0_i32_92, %c0_i32_93] : memref<8x128xf32, #tpu.memory_space<vmem>> -> memref<2x128xf32, #tpu.memory_space<vmem>>
    %c0_i32_94 = arith.constant 0 : i32
    %301 = tpu.memref_slice %arg11[%0, %c0_i32_94] : memref<128x128xf32, #tpu.memory_space<any>> -> memref<2x128xf32, #tpu.memory_space<any>>
    %302 = tpu.memref_slice %arg14[%c1_i32] : memref<2x!tpu.dma_semaphore, #tpu.memory_space<semaphore_mem>> -> memref<1x!tpu.dma_semaphore, #tpu.memory_space<semaphore_mem>>
    %303 = tpu.memref_squeeze %302 : memref<1x!tpu.dma_semaphore, #tpu.memory_space<semaphore_mem>> -> memref<!tpu.dma_semaphore, #tpu.memory_space<semaphore_mem>>
    tpu.enqueue_dma source(%300 : memref<2x128xf32, #tpu.memory_space<vmem>>) target(%301 : memref<2x128xf32, #tpu.memory_space<any>>) target_semaphore(%303 : memref<!tpu.dma_semaphore, #tpu.memory_space<semaphore_mem>>)
    %c1_i32_95 = arith.constant 1 : i32
    %c0_i32_96 = arith.constant 0 : i32
    %c0_i32_97 = arith.constant 0 : i32
    %304 = tpu.memref_slice %arg9[%c0_i32_96, %c0_i32_97] : memref<8x128xf32, #tpu.memory_space<vmem>> -> memref<2x128xf32, #tpu.memory_space<vmem>>
    %c0_i32_98 = arith.constant 0 : i32
    %305 = tpu.memref_slice %arg11[%0, %c0_i32_98] : memref<128x128xf32, #tpu.memory_space<any>> -> memref<2x128xf32, #tpu.memory_space<any>>
    %306 = tpu.memref_slice %arg14[%c1_i32_95] : memref<2x!tpu.dma_semaphore, #tpu.memory_space<semaphore_mem>> -> memref<1x!tpu.dma_semaphore, #tpu.memory_space<semaphore_mem>>
    %307 = tpu.memref_squeeze %306 : memref<1x!tpu.dma_semaphore, #tpu.memory_space<semaphore_mem>> -> memref<!tpu.dma_semaphore, #tpu.memory_space<semaphore_mem>>
    tpu.wait_dma2 semaphore(%307 : memref<!tpu.dma_semaphore, #tpu.memory_space<semaphore_mem>>) src(%304 : memref<2x128xf32, #tpu.memory_space<vmem>>) dst(%305 : memref<2x128xf32, #tpu.memory_space<any>>)
    return
  }
}

</mosaic_0001>

<bundles_post_ra>
// kernel: decoder_forward.1
= control target key start
LH: loop header
LB: loop body
LE: loop exit
PB: predicated region body
PF: predicated region fallthrough
CT: control target
= control target key end

     0   :  { %18 = vsyncpa [#allocation7], 0  ;;  %s3548_s0 = inlined_call_operand.<no memory space> [shape: s32[1], index: 0, kind: input, shape index: {}]   ;;  %s3549_s1 = inlined_call_operand.vmem [shape: f32[64,128], index: 1, kind: input, shape index: {}]   ;;  %s3550_s2 = inlined_call_operand.vmem [shape: f32[128,128], index: 2, kind: input, shape index: {}, may-alias: {2,11}]   ;;  %s3551_s3 = inlined_call_operand.vmem [shape: f32[8,128], index: 3, kind: input, shape index: {}]   ;;  %s3552_s4 = inlined_call_operand.vmem [shape: f32[8,128], index: 4, kind: input, shape index: {}]   ;;  %s3553_s5 = inlined_call_operand.vmem [shape: bf16[128,512], index: 5, kind: input, shape index: {}]   ;;  %s3554_s6 = inlined_call_operand.vmem [shape: bf16[128,512], index: 6, kind: input, shape index: {}]   ;;  %s3555_s7 = inlined_call_operand.vmem [shape: f32[1,512], index: 7, kind: input, shape index: {}]   ;;  %s3556_s8 = inlined_call_operand.hbm [shape: f32[8,128], index: 8, kind: output, shape index: {0}]   ;;  %s3557_s9 = inlined_call_operand.vmem [shape: f32[8,128], index: 9, kind: output, shape index: {1}]   ;;  %s3558_s10 = inlined_call_operand.vmem [shape: f32[8,128], index: 10, kind: output, shape index: {2}]   ;;  %s3559_s11 = inlined_call_operand.vmem [shape: f32[128,128], index: 11, kind: output, shape index: {3}, may-alias: {2,11}]  }
   0x1   :  { %v67_v0 = vld [vmem:[%s3550_s2] sm:$0xff]  ;;  %v69_v1 = vld [vmem:[%s3550_s2 + $0x8] sm:$0xff]  ;;  %v71_v2 = vld [vmem:[%s3550_s2 + $0x10] sm:$0xff] }
   0x2   :  { %v73_v3 = vld [vmem:[%s3550_s2 + $0x18] sm:$0xff]  ;;  %v75_v4 = vld [vmem:[%s3550_s2 + $0x20] sm:$0xff]  ;;  %v77_v5 = vld [vmem:[%s3550_s2 + $0x28] sm:$0xff] }
   0x3   :  { %v79_v6 = vld [vmem:[%s3550_s2 + $0x30] sm:$0xff]  ;;  %v81_v7 = vld [vmem:[%s3550_s2 + $0x38] sm:$0xff]  ;;  %v83_v8 = vld [vmem:[%s3550_s2 + $0x40] sm:$0xff] }
   0x4   :  { %v85_v9 = vld [vmem:[%s3550_s2 + $0x48] sm:$0xff]  ;;  %v87_v10 = vld [vmem:[%s3550_s2 + $0x50] sm:$0xff]  ;;  %v89_v11 = vld [vmem:[%s3550_s2 + $0x58] sm:$0xff] }
   0x5   :  { %v91_v12 = vld [vmem:[%s3550_s2 + $0x60] sm:$0xff]  ;;  %v93_v13 = vld [vmem:[%s3550_s2 + $0x68] sm:$0xff]  ;;  %v95_v14 = vld [vmem:[%s3550_s2 + $0x70] sm:$0xff] }
   0x6   :  { %v97_v15 = vld [vmem:[%s3550_s2 + $0x78] sm:$0xff] }
   0x7   :  { %106 = vsyncadd [#allocation4], 2048  ;;  %v134_v16 = vpack.c.bf16 %v69_v1, %v67_v0  ;;  %v135_v17 = vpack.c.bf16 %v73_v3, %v71_v2 }
   0x8   :  { %2477 = dma.done.wait [#allocation4], 2048 }
   0x9   :  { %2478 = vsyncadd [#allocation4], 4294965248  ;;  %2131 = vmatprep.subr.bf16.mxu0 %v134_v16  ;;  %2155 = vmatprep.subr.bf16.mxu1 %v134_v16  ;;  %v136_v18 = vpack.c.bf16 %v77_v5, %v75_v4  ;;  %v2596_v19 = vld [vmem:[%s3549_s1] sm:$0xff]  ;;  %v2601_v20 = vld [vmem:[%s3549_s1 + $0x8] sm:$0xff]  ;;  %v137_v22 = vpack.c.bf16 %v81_v7, %v79_v6  ;;  %v138_v23 = vpack.c.bf16 %v85_v9, %v83_v8  ;;  %vm1885_vm2 = vcmask 1040384  }
   0xa   :  { %2132 = vmatpush3.bf16.xpose.msra.mxu0 %v134_v16  ;;  %2156 = vmatpush3.bf16.msra.mxu1 %v134_v16  ;;  %v142_v21 = vpack.c.bf16 %v2601_v20, %v2596_v19  ;;  %v139_v24 = vpack.c.bf16 %v89_v11, %v87_v10  ;;  %v140_v25 = vpack.c.bf16 %v93_v13, %v91_v12  ;;  %v2608_v27 = vld [vmem:[%s3549_s1 + $0x10] sm:$0xff]  ;;  %v2613_v28 = vld [vmem:[%s3549_s1 + $0x18] sm:$0xff]  ;;  %v2618_v29 = vld [vmem:[%s3549_s1 + $0x20] sm:$0xff]  ;;  %vm1887_vm3 = vcmask 1041408  }
   0xb   :  { %2133 = vmatprep.subr.bf16.mxu0 %v135_v17  ;;  %2157 = vmatprep.subr.bf16.mxu1 %v135_v17  ;;  %v141_v26 = vpack.c.bf16 %v97_v15, %v95_v14  ;;  %v2623_v30 = vld [vmem:[%s3549_s1 + $0x28] sm:$0xff]  ;;  %v143_v31 = vpack.c.bf16 %v2613_v28, %v2608_v27  ;;  %v2632_v33 = vld [vmem:[%s3549_s1 + $0x30] sm:$0xff]  ;;  %v2637_v34 = vld [vmem:[%s3549_s1 + $0x38] sm:$0xff]  ;;  %vm1889_vm4 = vcmask 1042432   ;;  %vm1891_vm5 = vcmask 1043456  }
   0xc   :  { %2147 = vmatprep.mubr.bf16.mxu0 %v142_v21  ;;  %v144_v32 = vpack.c.bf16 %v2623_v30, %v2618_v29  ;;  %v145_v35 = vpack.c.bf16 %v2637_v34, %v2632_v33  ;;  %v2183_v36 = vld [vmem:[%s3553_s5 + $0x4] ss:$16 sps:$4 sm:$0xff]   ;;  %v2184_v37 = vld [vmem:[%s3553_s5 + $0x8] ss:$16 sps:$4 sm:$0xff]   ;;  %v2186_v38 = vld [vmem:[%s3553_s5 + $0xc] ss:$16 sps:$4 sm:$0xff]  }
   0xd   :  { %v2192_v39 = vld [vmem:[%s3553_s5 + $0x2c] ss:$16 sps:$4 sm:$0xff]   ;;  %v2190_v40 = vld [vmem:[%s3553_s5 + $0x28] ss:$16 sps:$4 sm:$0xff]   ;;  %vm1893_vm6 = vcmask 1044480   ;;  %vm1895_vm7 = vcmask 1045504  }
   0xe   :  { %2158 = vmatpush3.bf16.msra.mxu1 %v135_v17  ;;  %v2198_v41 = vld [vmem:[%s3553_s5 + $0x4c] ss:$16 sps:$4 sm:$0xff]   ;;  %v2196_v42 = vld [vmem:[%s3553_s5 + $0x48] ss:$16 sps:$4 sm:$0xff]   ;;  %vm1897_vm8 = vcmask 1046528  }
   0xf   :  { %2159 = vmatprep.subr.bf16.mxu1 %v136_v18  ;;  %v2204_v43 = vld [vmem:[%s3553_s5 + $0x6c] ss:$16 sps:$4 sm:$0xff]   ;;  %v2202_v44 = vld [vmem:[%s3553_s5 + $0x68] ss:$16 sps:$4 sm:$0xff]  }
  0x10   :  { %v2210_v45 = vld [vmem:[%s3553_s5 + $0x8c] ss:$16 sps:$4 sm:$0xff]   ;;  %v2208_v46 = vld [vmem:[%s3553_s5 + $0x88] ss:$16 sps:$4 sm:$0xff]  }
  0x11   :  { %v2216_v47 = vld [vmem:[%s3553_s5 + $0xac] ss:$16 sps:$4 sm:$0xff]   ;;  %v2214_v48 = vld [vmem:[%s3553_s5 + $0xa8] ss:$16 sps:$4 sm:$0xff]  }
  0x12   :  { %2134 = vmatpush3.bf16.xpose.msra.mxu0 %v135_v17  ;;  %2160 = vmatpush3.bf16.msra.mxu1 %v136_v18 }
  0x13   :  { %2135 = vmatprep.subr.bf16.mxu0 %v136_v18  ;;  %2161 = vmatprep.subr.bf16.mxu1 %v137_v22 }
  0x16   :  { %2162 = vmatpush3.bf16.msra.mxu1 %v137_v22 }
  0x17   :  { %2163 = vmatprep.subr.bf16.mxu1 %v138_v23 }
  0x1a   :  { %2136 = vmatpush3.bf16.xpose.msra.mxu0 %v136_v18  ;;  %2164 = vmatpush3.bf16.msra.mxu1 %v138_v23 }
  0x1b   :  { %2137 = vmatprep.subr.bf16.mxu0 %v137_v22  ;;  %2165 = vmatprep.subr.bf16.mxu1 %v139_v24 }
  0x1e   :  { %2166 = vmatpush3.bf16.msra.mxu1 %v139_v24 }
  0x1f   :  { %2167 = vmatprep.subr.bf16.mxu1 %v140_v25 }
  0x22   :  { %2138 = vmatpush3.bf16.xpose.msra.mxu0 %v137_v22  ;;  %2168 = vmatpush3.bf16.msra.mxu1 %v140_v25 }
  0x23   :  { %2139 = vmatprep.subr.bf16.mxu0 %v138_v23  ;;  %2169 = vmatprep.subr.bf16.mxu1 %v141_v26 }
  0x26   :  { %2170 = vmatpush3.bf16.msra.mxu1 %v141_v26 }
  0x27   :  { %565 = vmatprep.subr.bf16.mxu1 %v2183_v36 }
  0x2a   :  { %2140 = vmatpush3.bf16.xpose.msra.mxu0 %v138_v23 }
  0x2b   :  { %2141 = vmatprep.subr.bf16.mxu0 %v139_v24 }
  0x32   :  { %2142 = vmatpush3.bf16.xpose.msra.mxu0 %v139_v24 }
  0x33   :  { %2143 = vmatprep.subr.bf16.mxu0 %v140_v25 }
  0x3a   :  { %2144 = vmatpush3.bf16.xpose.msra.mxu0 %v140_v25 }
  0x3b   :  { %2145 = vmatprep.subr.bf16.mxu0 %v141_v26 }
  0x42   :  { %2146 = vmatpush3.bf16.xpose.msra.mxu0 %v141_v26 }
  0x43   :  { %638 = vmatprep.subr.bf16.mxu0 %v2186_v38 }
  0x49   :  { %2148 = vmatmul.mubr.bf16.vlgmr.msra.gmra.mrb[0].mxu0 %v143_v31 }
  0x4a   :  { %2151 = vmatprep.mubr.bf16.mxu0 %v144_v32  ;;  %639 = vmatpush1.bf16.msra.mxu0 %v2184_v37 }
  0x4b   :  { %640 = vmatprep.subr.bf16.mxu0 %v2192_v39  ;;  %v258_v39 = vlaneseq }
  0x4e   :  { %641 = vmatpush1.bf16.msra.mxu0 %v2190_v40  ;;  %v259_v40 = vand.u32 127, %v258_v39 }
  0x4f   :  { %642 = vmatprep.subr.bf16.mxu0 %v2198_v41  ;;  %v260_v41 = vstv %s3548_s0 }
  0x50   :  { %vm261_vm0 = vcmp.lt.s32.totalorder %v259_v40, %v260_v41 }
  0x51   :  { %2152 = vmatmul.mubr.bf16.gmra.mrb[4].mxu0 %v145_v35  ;;  %vm2684_vm1 = vmpackc.low %vm261_vm0, %vm261_vm0 }
  0x52   :  { %643 = vmatpush1.bf16.msra.mxu0 %v2196_v42 }
  0x53   :  { %644 = vmatprep.subr.bf16.mxu0 %v2204_v43 }
  0x56   :  { %645 = vmatpush1.bf16.msra.mxu0 %v2202_v44 }
  0x57   :  { %646 = vmatprep.subr.bf16.mxu0 %v2210_v45 }
  0x5a   :  { %647 = vmatpush1.bf16.msra.mxu0 %v2208_v46 }
  0x5b   :  { %648 = vmatprep.subr.bf16.mxu0 %v2216_v47  ;;  %v2850_v47 = vld [vmem:[%s3554_s6 + $0x60] ss:$16 sps:$4 sm:$0xff]  }
  0x5e   :  { %649 = vmatpush1.bf16.msra.mxu0 %v2214_v48 }
 0x11c   :  { %v2149_v49 = vpop.f32.mrb[0].mxu0 }
 0x11d   :  { %v180_v50 = vpop.f32.mrb[1].mxu0 }
 0x11e   :  { %v2150_v51 = vpop.f32.mrb[2].mxu0 }
 0x11f   :  { %v183_v52 = vpop.f32.mrb[3].mxu0 }
 0x124   :  { %v2153_v53 = vpop.f32.mrb[4].mxu0 }
 0x125   :  { %v213_v54 = vmax.f32 %v2149_v49, %v2153_v53  ;;  %v196_v55 = vpop.f32.mrb[5].mxu0 }
 0x126   :  { %v211_v56 = vmax.f32 %v180_v50, %v196_v55  ;;  %v2154_v57 = vpop.f32.mrb[6].mxu0 }
 0x127   :  { %v214_v58 = vmax.f32 %v2150_v51, %v2154_v57  ;;  %v199_v59 = vpop.f32.mrb[7].mxu0 }
 0x128   :  { %v212_v60 = vmax.f32 %v183_v52, %v199_v59 }
 0x129   :  { %v216_v61 = vmax.f32 %v213_v54, %v214_v58  ;;  %v2181_v54 = vld [vmem:[%s3553_s5] ss:$16 sps:$4 sm:$0xff]  }
 0x12a   :  { %v215_v62 = vmax.f32 %v211_v56, %v212_v60  ;;  %v2187_v58 = vld [vmem:[%s3553_s5 + $0x20] ss:$16 sps:$4 sm:$0xff]  }
 0x12b   :  { %v2193_v60 = vld [vmem:[%s3553_s5 + $0x40] ss:$16 sps:$4 sm:$0xff]  }
 0x12c   :  { %v217_v63 = vmax.f32 %v215_v62, %v216_v61  ;;  %v2201_v61 = vld [vmem:[%s3553_s5 + $0x64] ss:$16 sps:$4 sm:$0xff]   ;;  %v2199_v62 = vld [vmem:[%s3553_s5 + $0x60] ss:$16 sps:$4 sm:$0xff]  }
 0x12e   :  { %v218_v0 = vsub.f32 %v180_v50, %v217_v63  ;;  %v219_v1 = vsub.f32 %v183_v52, %v217_v63  ;;  %v220_v2 = vsub.f32 %v2149_v49, %v217_v63  ;;  %v221_v3 = vsub.f32 %v2150_v51, %v217_v63 }
 0x12f   :  { %v222_v4 = vsub.f32 %v196_v55, %v217_v63  ;;  %v223_v5 = vsub.f32 %v199_v59, %v217_v63  ;;  %v224_v6 = vsub.f32 %v2153_v53, %v217_v63  ;;  %v225_v7 = vsub.f32 %v2154_v57, %v217_v63  ;;  %v2189_v57 = vld [vmem:[%s3553_s5 + $0x24] ss:$16 sps:$4 sm:$0xff]  }
 0x130   :  { %v226_v8 = vmul.f32 1.442695, %v218_v0  ;;  %v228_v9 = vmul.f32 1.442695, %v219_v1  ;;  %v230_v10 = vmul.f32 1.442695, %v220_v2 }
 0x131   :  { %v232_v11 = vmul.f32 1.442695, %v221_v3  ;;  %v234_v12 = vmul.f32 1.442695, %v222_v4  ;;  %v236_v13 = vmul.f32 1.442695, %v223_v5 }
 0x132   :  { %2277 = vpow2.f32 %v226_v8  ;;  %v238_v14 = vmul.f32 1.442695, %v224_v6  ;;  %v240_v15 = vmul.f32 1.442695, %v225_v7  ;;  %v2195_v59 = vld [vmem:[%s3553_s5 + $0x44] ss:$16 sps:$4 sm:$0xff]  }
 0x133   :  { %2279 = vpow2.f32 %v228_v9  ;;  %v2207_v63 = vld [vmem:[%s3553_s5 + $0x84] ss:$16 sps:$4 sm:$0xff]   ;;  %v2205_v0 = vld [vmem:[%s3553_s5 + $0x80] ss:$16 sps:$4 sm:$0xff]   ;;  %v2220_v5 = vld [vmem:[%s3553_s5 + $0xc8] ss:$16 sps:$4 sm:$0xff]  }
 0x134   :  { %2281 = vpow2.f32 %v230_v10  ;;  %v2213_v1 = vld [vmem:[%s3553_s5 + $0xa4] ss:$16 sps:$4 sm:$0xff]   ;;  %v2211_v2 = vld [vmem:[%s3553_s5 + $0xa0] ss:$16 sps:$4 sm:$0xff]   ;;  %v2222_v6 = vld [vmem:[%s3553_s5 + $0xcc] ss:$16 sps:$4 sm:$0xff]  }
 0x135   :  { %2283 = vpow2.f32 %v232_v11  ;;  %v2219_v3 = vld [vmem:[%s3553_s5 + $0xc4] ss:$16 sps:$4 sm:$0xff]   ;;  %v2217_v4 = vld [vmem:[%s3553_s5 + $0xc0] ss:$16 sps:$4 sm:$0xff]   ;;  %650 = vmatprep.subr.bf16.mxu0 %v2222_v6  ;;  %v2226_v9 = vld [vmem:[%s3553_s5 + $0xe8] ss:$16 sps:$4 sm:$0xff]  }
 0x136   :  { %2285 = vpow2.f32 %v234_v12  ;;  %651 = vmatpush1.bf16.msra.mxu0 %v2220_v5  ;;  %v2223_v7 = vld [vmem:[%s3553_s5 + $0xe0] ss:$16 sps:$4 sm:$0xff]   ;;  %v2225_v8 = vld [vmem:[%s3553_s5 + $0xe4] ss:$16 sps:$4 sm:$0xff]   ;;  %v2228_v10 = vld [vmem:[%s3553_s5 + $0xec] ss:$16 sps:$4 sm:$0xff]  }
 0x137   :  { %2287 = vpow2.f32 %v236_v13  ;;  %v2756_v11 = vld [vmem:[%s3554_s6 + $0x4] ss:$16 sps:$4 sm:$0xff]   ;;  %v3560_v12 = vmov 0   ;;  %652 = vmatprep.subr.bf16.mxu0 %v2228_v10  ;;  %v2762_v13 = vld [vmem:[%s3554_s6 + $0xc] ss:$16 sps:$4 sm:$0xff]  }
 0x138   :  { %2289 = vpow2.f32 %v238_v14  ;;  %670 = vmatprep.mubr.bf16.mxu0 %v3560_v12  ;;  %v383_v6 = vld [vmem:[%s3555_s7] sm:$0xf] }
 0x139   :  { %2291 = vpow2.f32 %v240_v15 }
 0x13a   :  { %653 = vmatpush1.bf16.msra.mxu0 %v2226_v9 }
 0x13b   :  { %983 = vmatprep.subr.bf16.mxu0 %v2762_v13 }
 0x13c   :  { %v2278_v16 = vpop.eup %2277 }
 0x13d   :  { %v2280_v17 = vpop.eup %2279 }
 0x13e   :  { %v242_v18 = vadd.f32 %v2280_v17, %v2278_v16  ;;  %v2282_v21 = vpop.eup %2281 }
 0x13f   :  { %v2284_v23 = vpop.eup %2283 }
 0x140   :  { %v243_v22 = vadd.f32 %v2282_v21, %v242_v18  ;;  %v2286_v25 = vpop.eup %2285 }
 0x141   :  { %v2288_v31 = vpop.eup %2287 }
 0x142   :  { %v244_v24 = vadd.f32 %v2284_v23, %v243_v22  ;;  %v2290_v35 = vpop.eup %2289 }
 0x143   :  { %v2292_v37 = vpop.eup %2291 }
 0x144   :  { %v245_v26 = vadd.f32 %v2286_v25, %v244_v24 }
 0x146   :  { %v246_v32 = vadd.f32 %v2288_v31, %v245_v26  ;;  %v2779_v26 = vld [vmem:[%s3554_s6 + $0x8] ss:$16 sps:$4 sm:$0xff]  }
 0x148   :  { %v247_v36 = vadd.f32 %v2290_v35, %v246_v32  ;;  %v2796_v32 = vld [vmem:[%s3554_s6 + $0x20] ss:$16 sps:$4 sm:$0xff]  }
 0x14a   :  { %v248_v38 = vadd.f32 %v2292_v37, %v247_v36 }
 0x14c   :  { %2293 = vrcp.f32 %v248_v38  ;;  %v2813_v38 = vld [vmem:[%s3554_s6 + $0x4c] ss:$16 sps:$4 sm:$0xff]  }
 0x156   :  { %v2294_v42 = vpop.eup %2293 }
 0x157   :  { %v250_v43 = vmul.f32 %v2294_v42, %v2278_v16  ;;  %v251_v44 = vmul.f32 %v2294_v42, %v2280_v17  ;;  %v252_v45 = vmul.f32 %v2294_v42, %v2282_v21  ;;  %v253_v46 = vmul.f32 %v2294_v42, %v2284_v23 }
 0x158   :  { %v254_v48 = vmul.f32 %v2294_v42, %v2286_v25  ;;  %v255_v49 = vmul.f32 %v2294_v42, %v2288_v31  ;;  %v256_v50 = vmul.f32 %v2294_v42, %v2290_v35  ;;  %v257_v51 = vmul.f32 %v2294_v42, %v2292_v37  ;;  %v2774_v25 = vld [vmem:[%s3554_s6] ss:$16 sps:$4 sm:$0xff]   ;;  %v2801_v35 = vld [vmem:[%s3554_s6 + $0x28] ss:$16 sps:$4 sm:$0xff]   ;;  %v2808_v37 = vld [vmem:[%s3554_s6 + $0x44] ss:$16 sps:$4 sm:$0xff]  }
 0x159   :  { %v2006_v52 = vpack.c.bf16 %v251_v44, %v250_v43  ;;  %v2009_v53 = vpack.c.bf16 %v253_v46, %v252_v45 }
 0x15a   :  { %v2012_v55 = vpack.c.bf16 %v255_v49, %v254_v48  ;;  %v2015_v56 = vpack.c.bf16 %v257_v51, %v256_v50  ;;  %v2855_v48 = vld [vmem:[%s3554_s6 + $0x68] ss:$16 sps:$4 sm:$0xff]   ;;  %v2862_v49 = vld [vmem:[%s3554_s6 + $0x84] ss:$16 sps:$4 sm:$0xff]   ;;  %v2867_v50 = vld [vmem:[%s3554_s6 + $0x8c] ss:$16 sps:$4 sm:$0xff]  }
 0x15b   :  { %2171 = vmatprep.mubr.msk.bf16.mxu1 %vm2684_vm1, %v2006_v52  ;;  %v2876_v51 = vld [vmem:[%s3554_s6 + $0x80] ss:$16 sps:$4 sm:$0xff]   ;;  %v2881_v52 = vld [vmem:[%s3554_s6 + $0x88] ss:$16 sps:$4 sm:$0xff]  }
 0x15c   :  { %2172 = vmatmul.mubr.msk.bf16.vlgmr.msra.gmra.mrb[0].mxu1 %vm2684_vm1, %v2009_v53  ;;  %v2888_v53 = vld [vmem:[%s3554_s6 + $0xa4] ss:$16 sps:$4 sm:$0xff]  }
 0x15d   :  { %2175 = vmatprep.mubr.msk.bf16.mxu1 %vm2684_vm1, %v2012_v55  ;;  %566 = vmatpush1.bf16.msra.mxu1 %v2181_v54  ;;  %v2893_v54 = vld [vmem:[%s3554_s6 + $0xac] ss:$16 sps:$4 sm:$0xff]   ;;  %v2900_v55 = vld [vmem:[%s3554_s6 + $0xa0] ss:$16 sps:$4 sm:$0xff]  }
 0x15e   :  { %567 = vmatprep.subr.bf16.mxu1 %v2189_v57  ;;  %v2912_v57 = vld [vmem:[%s3554_s6 + $0xc4] ss:$16 sps:$4 sm:$0xff]  }
 0x161   :  { %568 = vmatpush1.bf16.msra.mxu1 %v2187_v58  ;;  %v2917_v58 = vld [vmem:[%s3554_s6 + $0xcc] ss:$16 sps:$4 sm:$0xff]  }
 0x162   :  { %569 = vmatprep.subr.bf16.mxu1 %v2195_v59  ;;  %v2926_v59 = vld [vmem:[%s3554_s6 + $0xc0] ss:$16 sps:$4 sm:$0xff]  }
 0x164   :  { %2176 = vmatmul.mubr.msk.bf16.gmra.mrb[4].mxu1 %vm2684_vm1, %v2015_v56  ;;  %v2905_v56 = vld [vmem:[%s3554_s6 + $0xa8] ss:$16 sps:$4 sm:$0xff]  }
 0x165   :  { %570 = vmatpush1.bf16.msra.mxu1 %v2193_v60  ;;  %597 = vmatprep.mubr.bf16.mxu1 %v3560_v12  ;;  %v2931_v60 = vld [vmem:[%s3554_s6 + $0xc8] ss:$16 sps:$4 sm:$0xff]  }
 0x166   :  { %571 = vmatprep.subr.bf16.mxu1 %v2201_v61  ;;  %v2938_v61 = vld [vmem:[%s3554_s6 + $0xe4] ss:$16 sps:$4 sm:$0xff]  }
 0x169   :  { %572 = vmatpush1.bf16.msra.mxu1 %v2199_v62  ;;  %v2943_v62 = vld [vmem:[%s3554_s6 + $0xec] ss:$16 sps:$4 sm:$0xff]  }
 0x16a   :  { %573 = vmatprep.subr.bf16.mxu1 %v2207_v63  ;;  %v2950_v63 = vld [vmem:[%s3554_s6 + $0xe0] ss:$16 sps:$4 sm:$0xff]  }
 0x16d   :  { %574 = vmatpush1.bf16.msra.mxu1 %v2205_v0  ;;  %v2955_v0 = vld [vmem:[%s3554_s6 + $0xe8] ss:$16 sps:$4 sm:$0xff]  }
 0x16e   :  { %575 = vmatprep.subr.bf16.mxu1 %v2213_v1  ;;  %v743_v1 = vld [vmem:[%s3551_s3] sm:$0xff]  ;;  %s1902_s3 = scalar_lea.vmem %s3559_s11, %s3548_s0 }
 0x171   :  { %576 = vmatpush1.bf16.msra.mxu1 %v2211_v2  ;;  %v749_v2 = vpack.c.bf16 %v743_v1, %v743_v1 }
 0x172   :  { %577 = vmatprep.subr.bf16.mxu1 %v2219_v3  ;;  %v386_v3 = vshrl.u32 %v258_v39, 7 }
 0x174   :  { %v395_v5 = vsub.s32 2, %v386_v3 }
 0x175   :  { %578 = vmatpush1.bf16.msra.mxu1 %v2217_v4  ;;  %v387_v4 = vsub.s32 0, %v386_v3 }
 0x176   :  { %579 = vmatprep.subr.bf16.mxu1 %v2225_v8  ;;  %v399_v8 = vsub.s32 3, %v386_v3  ;;  %v396_v10 = vrot.slane %v383_v6, %v395_v5 }
 0x177   :  { %v388_v9 = vrot.slane %v383_v6, %v387_v4 }
 0x179   :  { %580 = vmatpush1.bf16.msra.mxu1 %v2223_v7  ;;  %v391_v7 = vsub.s32 1, %v386_v3 }
 0x17a   :  { %942 = vmatprep.subr.bf16.mxu1 %v2756_v11 }
 0x22f   :  { %v2173_v14 = vpop.f32.mrb[0].mxu1 }
 0x230   :  { %v308_v15 = vpop.f32.mrb[1].mxu1  ;;  %v341_v17 = vadd.f32 %v2173_v14, %v2608_v27  ;;  %v2784_v27 = vld [vmem:[%s3554_s6 + $0x24] ss:$16 sps:$4 sm:$0xff]   ;;  %v3006_v14 = vrot.slane %v383_v6, %v391_v7 }
 0x231   :  { %v2174_v16 = vpop.f32.mrb[2].mxu1  ;;  %v339_v22 = vadd.f32 %v308_v15, %v2596_v19  ;;  %v2789_v19 = vld [vmem:[%s3554_s6 + $0x2c] ss:$16 sps:$4 sm:$0xff]   ;;  %v3008_v15 = vrot.slane %v383_v6, %v399_v8 }
 0x232   :  { %v342_v18 = vadd.f32 %v2174_v16, %v2613_v28  ;;  %v311_v21 = vpop.f32.mrb[3].mxu1 }
 0x233   :  { %v340_v23 = vadd.f32 %v311_v21, %v2601_v20 }
 0x234   :  { %v348_v24 = vpack.c.bf16 %v342_v18, %v341_v17 }
 0x235   :  { %v347_v31 = vpack.c.bf16 %v340_v23, %v339_v22 }
 0x237   :  { %v2177_v20 = vpop.f32.mrb[4].mxu1  ;;  %598 = vmatmul.mubr.bf16.vlgmr.msra.gmra.mrb[8].mxu1 %v347_v31  ;;  %671 = vmatmul.mubr.bf16.vlgmr.msra.gmra.mrb[8].mxu0 %v347_v31 }
 0x238   :  { %943 = vmatpush1.bf16.msra.mxu1 %v2774_v25  ;;  %v324_v28 = vpop.f32.mrb[5].mxu1  ;;  %984 = vmatpush1.bf16.msra.mxu0 %v2779_v26  ;;  %v345_v40 = vadd.f32 %v2177_v20, %v2632_v33  ;;  %v2826_v33 = vld [vmem:[%s3554_s6 + $0x40] ss:$16 sps:$4 sm:$0xff]  }
 0x239   :  { %v2178_v36 = vpop.f32.mrb[6].mxu1  ;;  %944 = vmatprep.subr.bf16.mxu1 %v2784_v27  ;;  %985 = vmatprep.subr.bf16.mxu0 %v2789_v19  ;;  %v343_v43 = vadd.f32 %v324_v28, %v2618_v29  ;;  %v2838_v29 = vld [vmem:[%s3554_s6 + $0x64] ss:$16 sps:$4 sm:$0xff]  }
 0x23a   :  { %v346_v41 = vadd.f32 %v2178_v36, %v2637_v34  ;;  %v327_v42 = vpop.f32.mrb[7].mxu1  ;;  %607 = vmatprep.mubr.bf16.mxu1 %v3560_v12  ;;  %680 = vmatprep.mubr.bf16.mxu0 %v3560_v12  ;;  %v2831_v34 = vld [vmem:[%s3554_s6 + $0x48] ss:$16 sps:$4 sm:$0xff]  }
 0x23b   :  { %v344_v44 = vadd.f32 %v327_v42, %v2623_v30  ;;  %v2843_v30 = vld [vmem:[%s3554_s6 + $0x6c] ss:$16 sps:$4 sm:$0xff]  }
 0x23c   :  { %v350_v45 = vpack.c.bf16 %v346_v41, %v345_v40  ;;  %945 = vmatpush1.bf16.msra.mxu1 %v2796_v32  ;;  %986 = vmatpush1.bf16.msra.mxu0 %v2801_v35 }
 0x23d   :  { %v349_v46 = vpack.c.bf16 %v344_v44, %v343_v43  ;;  %946 = vmatprep.subr.bf16.mxu1 %v2808_v37  ;;  %987 = vmatprep.subr.bf16.mxu0 %v2813_v38 }
 0x23f   :  { %608 = vmatmul.mubr.bf16.gmra.mrb[12].mxu1 %v348_v24  ;;  %681 = vmatmul.mubr.bf16.gmra.mrb[12].mxu0 %v348_v24 }
 0x240   :  { %947 = vmatpush1.bf16.msra.mxu1 %v2826_v33  ;;  %988 = vmatpush1.bf16.msra.mxu0 %v2831_v34 }
 0x241   :  { %948 = vmatprep.subr.bf16.mxu1 %v2838_v29  ;;  %989 = vmatprep.subr.bf16.mxu0 %v2843_v30 }
 0x242   :  { %617 = vmatprep.mubr.bf16.mxu1 %v3560_v12  ;;  %690 = vmatprep.mubr.bf16.mxu0 %v3560_v12 }
 0x244   :  { %949 = vmatpush1.bf16.msra.mxu1 %v2850_v47  ;;  %990 = vmatpush1.bf16.msra.mxu0 %v2855_v48 }
 0x245   :  { %950 = vmatprep.subr.bf16.mxu1 %v2862_v49  ;;  %991 = vmatprep.subr.bf16.mxu0 %v2867_v50 }
 0x247   :  { %618 = vmatmul.mubr.bf16.gmra.mrb[16].mxu1 %v349_v46  ;;  %691 = vmatmul.mubr.bf16.gmra.mrb[16].mxu0 %v349_v46 }
 0x248   :  { %951 = vmatpush1.bf16.msra.mxu1 %v2876_v51  ;;  %992 = vmatpush1.bf16.msra.mxu0 %v2881_v52 }
 0x249   :  { %952 = vmatprep.subr.bf16.mxu1 %v2888_v53  ;;  %993 = vmatprep.subr.bf16.mxu0 %v2893_v54 }
 0x24a   :  { %627 = vmatprep.mubr.bf16.mxu1 %v3560_v12  ;;  %700 = vmatprep.mubr.bf16.mxu0 %v3560_v12 }
 0x24c   :  { %953 = vmatpush1.bf16.msra.mxu1 %v2900_v55  ;;  %994 = vmatpush1.bf16.msra.mxu0 %v2905_v56 }
 0x24d   :  { %954 = vmatprep.subr.bf16.mxu1 %v2912_v57  ;;  %995 = vmatprep.subr.bf16.mxu0 %v2917_v58 }
 0x24f   :  { %628 = vmatmul.mubr.bf16.gmra.mrb[20].mxu1 %v350_v45  ;;  %701 = vmatmul.mubr.bf16.gmra.mrb[20].mxu0 %v350_v45 }
 0x250   :  { %955 = vmatpush1.bf16.msra.mxu1 %v2926_v59  ;;  %996 = vmatpush1.bf16.msra.mxu0 %v2931_v60 }
 0x251   :  { %956 = vmatprep.subr.bf16.mxu1 %v2938_v61  ;;  %997 = vmatprep.subr.bf16.mxu0 %v2943_v62 }
 0x252   :  { %974 = vmatprep.mubr.bf16.mxu1 %v3560_v12  ;;  %1015 = vmatprep.mubr.bf16.mxu0 %v3560_v12 }
 0x254   :  { %957 = vmatpush1.bf16.msra.mxu1 %v2950_v63  ;;  %998 = vmatpush1.bf16.msra.mxu0 %v2955_v0 }
 0x255   :  { %1058 = vmatprep.subr.bf16.mxu1 %v2756_v11  ;;  %1099 = vmatprep.subr.bf16.mxu0 %v2762_v13 }
 0x257   :  { %975 = vmatmul.mubr.bf16.vlgmr.msra.gmra.mrb[24].mxu1 %v749_v2  ;;  %1016 = vmatmul.mubr.bf16.vlgmr.msra.gmra.mrb[24].mxu0 %v749_v2 }
 0x258   :  { %1059 = vmatpush1.bf16.msra.mxu1 %v2774_v25  ;;  %1100 = vmatpush1.bf16.msra.mxu0 %v2779_v26 }
 0x259   :  { %1060 = vmatprep.subr.bf16.mxu1 %v2784_v27  ;;  %1101 = vmatprep.subr.bf16.mxu0 %v2789_v19 }
 0x25a   :  { %1090 = vmatprep.mubr.bf16.mxu1 %v3560_v12  ;;  %1131 = vmatprep.mubr.bf16.mxu0 %v3560_v12 }
 0x25c   :  { %1061 = vmatpush1.bf16.msra.mxu1 %v2796_v32  ;;  %1102 = vmatpush1.bf16.msra.mxu0 %v2801_v35 }
 0x25d   :  { %1062 = vmatprep.subr.bf16.mxu1 %v2808_v37  ;;  %1103 = vmatprep.subr.bf16.mxu0 %v2813_v38 }
 0x260   :  { %1063 = vmatpush1.bf16.msra.mxu1 %v2826_v33  ;;  %1104 = vmatpush1.bf16.msra.mxu0 %v2831_v34 }
 0x261   :  { %1064 = vmatprep.subr.bf16.mxu1 %v2838_v29  ;;  %1105 = vmatprep.subr.bf16.mxu0 %v2843_v30 }
 0x264   :  { %1065 = vmatpush1.bf16.msra.mxu1 %v2850_v47  ;;  %1106 = vmatpush1.bf16.msra.mxu0 %v2855_v48 }
 0x265   :  { %1066 = vmatprep.subr.bf16.mxu1 %v2862_v49  ;;  %1107 = vmatprep.subr.bf16.mxu0 %v2867_v50 }
 0x268   :  { %1067 = vmatpush1.bf16.msra.mxu1 %v2876_v51  ;;  %1108 = vmatpush1.bf16.msra.mxu0 %v2881_v52 }
 0x269   :  { %1068 = vmatprep.subr.bf16.mxu1 %v2888_v53  ;;  %1109 = vmatprep.subr.bf16.mxu0 %v2893_v54 }
 0x26c   :  { %1069 = vmatpush1.bf16.msra.mxu1 %v2900_v55  ;;  %1110 = vmatpush1.bf16.msra.mxu0 %v2905_v56 }
 0x26d   :  { %1070 = vmatprep.subr.bf16.mxu1 %v2912_v57  ;;  %1111 = vmatprep.subr.bf16.mxu0 %v2917_v58 }
 0x270   :  { %1071 = vmatpush1.bf16.msra.mxu1 %v2926_v59  ;;  %1112 = vmatpush1.bf16.msra.mxu0 %v2931_v60 }
 0x271   :  { %1072 = vmatprep.subr.bf16.mxu1 %v2938_v61  ;;  %1113 = vmatprep.subr.bf16.mxu0 %v2943_v62 }
 0x274   :  { %1073 = vmatpush1.bf16.msra.mxu1 %v2950_v63  ;;  %1114 = vmatpush1.bf16.msra.mxu0 %v2955_v0 }
 0x275   :  { %1174 = vmatprep.subr.bf16.mxu1 %v2756_v11  ;;  %1215 = vmatprep.subr.bf16.mxu0 %v2762_v13 }
 0x30a   :  { %v599_v16 = vpop.f32.mrb[8].mxu1  ;;  %v672_v17 = vpop.f32.mrb[8].mxu0 }
 0x30b   :  { %v3010_v18 = vadd.f32 %v599_v16, %v388_v9  ;;  %v3012_v21 = vadd.f32 %v672_v17, %v396_v10  ;;  %v601_v39 = vpop.f32.mrb[9].mxu1  ;;  %v674_v22 = vpop.f32.mrb[9].mxu0 }
 0x30c   :  { %v3015_v23 = vadd.f32 %v601_v39, %v3006_v14  ;;  %v3018_v24 = vadd.f32 %v674_v22, %v3008_v15  ;;  %v603_v31 = vpop.f32.mrb[10].mxu1  ;;  %v676_v20 = vpop.f32.mrb[10].mxu0 }
 0x30d   :  { %v3020_v28 = vadd.f32 %v603_v31, %v388_v9  ;;  %v3022_v36 = vadd.f32 %v676_v20, %v396_v10  ;;  %v605_v40 = vpop.f32.mrb[11].mxu1  ;;  %v678_v41 = vpop.f32.mrb[11].mxu0 }
 0x30e   :  { %v3025_v42 = vadd.f32 %v605_v40, %v3006_v14  ;;  %v3028_v43 = vadd.f32 %v678_v41, %v3008_v15 }
 0x312   :  { %v609_v44 = vpop.f32.mrb[12].mxu1  ;;  %v682_v45 = vpop.f32.mrb[12].mxu0 }
 0x313   :  { %v3030_v46 = vadd.f32 %v609_v44, %v388_v9  ;;  %v3032_v1 = vadd.f32 %v682_v45, %v396_v10  ;;  %v611_v2 = vpop.f32.mrb[13].mxu1  ;;  %v684_v3 = vpop.f32.mrb[13].mxu0 }
 0x314   :  { %v3035_v4 = vadd.f32 %v611_v2, %v3006_v14  ;;  %v3038_v5 = vadd.f32 %v684_v3, %v3008_v15  ;;  %v613_v6 = vpop.f32.mrb[14].mxu1  ;;  %v686_v7 = vpop.f32.mrb[14].mxu0 }
 0x315   :  { %v3040_v8 = vadd.f32 %v613_v6, %v388_v9  ;;  %v3042_v16 = vadd.f32 %v686_v7, %v396_v10  ;;  %v615_v17 = vpop.f32.mrb[15].mxu1  ;;  %v688_v39 = vpop.f32.mrb[15].mxu0 }
 0x316   :  { %v3045_v22 = vadd.f32 %v615_v17, %v3006_v14  ;;  %v3048_v31 = vadd.f32 %v688_v39, %v3008_v15 }
 0x318   :  { %3564 = vst [vmem:[#allocation13_spill] sm:$0xff] %v3045_v22  ;;  %3565 = vst [vmem:[#allocation14_spill] sm:$0xff] %v3048_v31 }
 0x31a   :  { %v619_v20 = vpop.f32.mrb[16].mxu1  ;;  %v692_v40 = vpop.f32.mrb[16].mxu0 }
 0x31b   :  { %v3050_v41 = vadd.f32 %v619_v20, %v388_v9  ;;  %v3052_v44 = vadd.f32 %v692_v40, %v396_v10  ;;  %v621_v45 = vpop.f32.mrb[17].mxu1  ;;  %v694_v2 = vpop.f32.mrb[17].mxu0 }
 0x31c   :  { %v3055_v3 = vadd.f32 %v621_v45, %v3006_v14  ;;  %v3058_v6 = vadd.f32 %v694_v2, %v3008_v15  ;;  %v623_v7 = vpop.f32.mrb[18].mxu1  ;;  %v696_v17 = vpop.f32.mrb[18].mxu0 }
 0x31d   :  { %3566 = vst [vmem:[#allocation15_spill] sm:$0xff] %v3050_v41  ;;  %3567 = vst [vmem:[#allocation16_spill] sm:$0xff] %v3052_v44  ;;  %v3060_v12 = vadd.f32 %v623_v7, %v388_v9  ;;  %v3062_v39 = vadd.f32 %v696_v17, %v396_v10  ;;  %v625_v31 = vpop.f32.mrb[19].mxu1  ;;  %v698_v22 = vpop.f32.mrb[19].mxu0 }
 0x31e   :  { %3568 = vst [vmem:[#allocation17_spill] sm:$0xff] %v3055_v3  ;;  %3569 = vst [vmem:[#allocation18_spill] sm:$0xff] %v3058_v6  ;;  %v3065_v20 = vadd.f32 %v625_v31, %v3006_v14  ;;  %v3068_v40 = vadd.f32 %v698_v22, %v3008_v15 }
 0x31f   :  { %3570 = vst [vmem:[#allocation19_spill] sm:$0xff] %v3060_v12  ;;  %3571 = vst [vmem:[#allocation20_spill] sm:$0xff] %v3062_v39 }
 0x320   :  { %3572 = vst [vmem:[#allocation21_spill] sm:$0xff] %v3065_v20  ;;  %3573 = vst [vmem:[#allocation22_spill] sm:$0xff] %v3068_v40 }
 0x322   :  { %v629_v44 = vpop.f32.mrb[20].mxu1  ;;  %v702_v45 = vpop.f32.mrb[20].mxu0 }
 0x323   :  { %v3070_v3 = vadd.f32 %v629_v44, %v388_v9  ;;  %v3072_v2 = vadd.f32 %v702_v45, %v396_v10  ;;  %v631_v6 = vpop.f32.mrb[21].mxu1  ;;  %v704_v41 = vpop.f32.mrb[21].mxu0 }
 0x324   :  { %v3075_v7 = vadd.f32 %v631_v6, %v3006_v14  ;;  %v3078_v17 = vadd.f32 %v704_v41, %v3008_v15  ;;  %v633_v39 = vpop.f32.mrb[22].mxu1  ;;  %v706_v31 = vpop.f32.mrb[22].mxu0 }
 0x325   :  { %3574 = vst [vmem:[#allocation23_spill] sm:$0xff] %v3070_v3  ;;  %3575 = vst [vmem:[#allocation24_spill] sm:$0xff] %v3072_v2  ;;  %v3080_v20 = vadd.f32 %v633_v39, %v388_v9  ;;  %v3082_v22 = vadd.f32 %v706_v31, %v396_v10  ;;  %v635_v40 = vpop.f32.mrb[23].mxu1  ;;  %v708_v12 = vpop.f32.mrb[23].mxu0 }
 0x326   :  { %3576 = vst [vmem:[#allocation25_spill] sm:$0xff] %v3075_v7  ;;  %3577 = vst [vmem:[#allocation26_spill] sm:$0xff] %v3078_v17  ;;  %v3085_v44 = vadd.f32 %v635_v40, %v3006_v14  ;;  %v3088_v45 = vadd.f32 %v708_v12, %v3008_v15 }
 0x327   :  { %3578 = vst [vmem:[#allocation27_spill] sm:$0xff] %v3082_v22 }
 0x328   :  { %3579 = vst [vmem:[#allocation28_spill] sm:$0xff] %v3085_v44  ;;  %3580 = vst [vmem:[#allocation29_spill] sm:$0xff] %v3088_v45 }
 0x32a   :  { %v976_v2 = vpop.f32.mrb[24].mxu1  ;;  %v1017_v6 = vpop.f32.mrb[24].mxu0 }
 0x32b   :  { %v1024_v7 = vadd.f32 %v976_v2, %v3010_v18  ;;  %v1026_v41 = vadd.f32 %v1017_v6, %v3012_v21  ;;  %v978_v17 = vpop.f32.mrb[25].mxu1  ;;  %v1019_v3 = vpop.f32.mrb[25].mxu0 }
 0x32c   :  { %v1025_v9 = vadd.f32 %v978_v17, %v3015_v23  ;;  %v1027_v10 = vadd.f32 %v1019_v3, %v3018_v24  ;;  %v980_v39 = vpop.f32.mrb[26].mxu1  ;;  %v1021_v31 = vpop.f32.mrb[26].mxu0  ;;  %v744_v24 = vld [vmem:[%s3552_s4] sm:$0xff] }
 0x32d   :  { %v2081_v22 = vmul.f32 -1.442695, %v1024_v7  ;;  %v981_v14 = vpop.f32.mrb[27].mxu1  ;;  %v1022_v40 = vpop.f32.mrb[27].mxu0  ;;  %v3581_v39 = vmov 0  }
 0x32e   :  { %v2082_v44 = vmul.f32 -1.442695, %v1025_v9  ;;  %v2083_v12 = vmul.f32 -1.442695, %v1027_v10 }
 0x32f   :  { %2295 = vpow2.f32 %v2081_v22 }
 0x330   :  { %2297 = vpow2.f32 %v2082_v44 }
 0x331   :  { %2299 = vpow2.f32 %v2083_v12 }
 0x332   :  { %2301 = vtanh.f32 %v1026_v41 }
 0x339   :  { %v2296_v15 = vpop.eup %2295 }
 0x33a   :  { %v2298_v45 = vpop.eup %2297  ;;  %v1031_v18 = vadd.f32 1.0, %v2296_v15 }
 0x33b   :  { %v1037_v21 = vadd.f32 1.0, %v2298_v45  ;;  %v2300_v23 = vpop.eup %2299 }
 0x33c   :  { %2303 = vrcp.f32 %v1031_v18  ;;  %v2302_v2 = vpop.eup %2301  ;;  %v1044_v22 = vadd.f32 1.0, %v2300_v23 }
 0x33d   :  { %2305 = vrcp.f32 %v1037_v21 }
 0x33e   :  { %2307 = vrcp.f32 %v1044_v22 }
 0x346   :  { %v2304_v3 = vpop.eup %2303 }
 0x347   :  { %v2306_v7 = vpop.eup %2305  ;;  %v1048_v17 = vmul.f32 %v2304_v3, %v2302_v2 }
 0x348   :  { %v1047_v44 = vmul.f32 %v2306_v7, %v744_v24  ;;  %v2308_v41 = vpop.eup %2307 }
 0x34a   :  { %v3097_v6 = vadd.f32 %v1048_v17, %v1047_v44 }
 0x34c   :  { %2309 = vtanh.f32 %v3097_v6 }
 0x356   :  { %v2310_v45 = vpop.eup %2309 }
 0x357   :  { %v3100_v9 = vmul.f32 %v2310_v45, %v2308_v41 }
 0x359   :  { %v1057_v10 = vpack.c.bf16 %v3100_v9, %v3100_v9 }
 0x35b   :  { %1091 = vmatmul.mubr.bf16.vlgmr.msra.gmra.mrb[28].mxu1 %v1057_v10  ;;  %1132 = vmatmul.mubr.bf16.vlgmr.msra.gmra.mrb[28].mxu0 %v1057_v10 }
 0x35c   :  { %1175 = vmatpush1.bf16.msra.mxu1 %v2774_v25  ;;  %1216 = vmatpush1.bf16.msra.mxu0 %v2779_v26 }
 0x35d   :  { %1176 = vmatprep.subr.bf16.mxu1 %v2784_v27  ;;  %1217 = vmatprep.subr.bf16.mxu0 %v2789_v19 }
 0x35e   :  { %1206 = vmatprep.mubr.bf16.mxu1 %v3581_v39  ;;  %1247 = vmatprep.mubr.bf16.mxu0 %v3581_v39 }
 0x360   :  { %1177 = vmatpush1.bf16.msra.mxu1 %v2796_v32  ;;  %1218 = vmatpush1.bf16.msra.mxu0 %v2801_v35 }
 0x361   :  { %1178 = vmatprep.subr.bf16.mxu1 %v2808_v37  ;;  %1219 = vmatprep.subr.bf16.mxu0 %v2813_v38 }
 0x364   :  { %1179 = vmatpush1.bf16.msra.mxu1 %v2826_v33  ;;  %1220 = vmatpush1.bf16.msra.mxu0 %v2831_v34 }
 0x365   :  { %1180 = vmatprep.subr.bf16.mxu1 %v2838_v29  ;;  %1221 = vmatprep.subr.bf16.mxu0 %v2843_v30 }
 0x368   :  { %1181 = vmatpush1.bf16.msra.mxu1 %v2850_v47  ;;  %1222 = vmatpush1.bf16.msra.mxu0 %v2855_v48 }
 0x369   :  { %1182 = vmatprep.subr.bf16.mxu1 %v2862_v49  ;;  %1223 = vmatprep.subr.bf16.mxu0 %v2867_v50 }
 0x36c   :  { %1183 = vmatpush1.bf16.msra.mxu1 %v2876_v51  ;;  %1224 = vmatpush1.bf16.msra.mxu0 %v2881_v52 }
 0x36d   :  { %1184 = vmatprep.subr.bf16.mxu1 %v2888_v53  ;;  %1225 = vmatprep.subr.bf16.mxu0 %v2893_v54 }
 0x370   :  { %1185 = vmatpush1.bf16.msra.mxu1 %v2900_v55  ;;  %1226 = vmatpush1.bf16.msra.mxu0 %v2905_v56 }
 0x371   :  { %1186 = vmatprep.subr.bf16.mxu1 %v2912_v57  ;;  %1227 = vmatprep.subr.bf16.mxu0 %v2917_v58 }
 0x374   :  { %1187 = vmatpush1.bf16.msra.mxu1 %v2926_v59  ;;  %1228 = vmatpush1.bf16.msra.mxu0 %v2931_v60 }
 0x375   :  { %1188 = vmatprep.subr.bf16.mxu1 %v2938_v61  ;;  %1229 = vmatprep.subr.bf16.mxu0 %v2943_v62 }
 0x378   :  { %1189 = vmatpush1.bf16.msra.mxu1 %v2950_v63  ;;  %1230 = vmatpush1.bf16.msra.mxu0 %v2955_v0 }
 0x379   :  { %1290 = vmatprep.subr.bf16.mxu1 %v2756_v11  ;;  %1331 = vmatprep.subr.bf16.mxu0 %v2762_v13 }
 0x42e   :  { %v1092_v31 = vpop.f32.mrb[28].mxu1  ;;  %v1133_v14 = vpop.f32.mrb[28].mxu0 }
 0x42f   :  { %v1140_v40 = vadd.f32 %v1092_v31, %v3020_v28  ;;  %v1142_v12 = vadd.f32 %v1133_v14, %v3022_v36  ;;  %v1094_v15 = vpop.f32.mrb[29].mxu1  ;;  %v1135_v18 = vpop.f32.mrb[29].mxu0 }
 0x430   :  { %v1141_v21 = vadd.f32 %v1094_v15, %v3025_v42  ;;  %v1143_v23 = vadd.f32 %v1135_v18, %v3028_v43  ;;  %v1096_v2 = vpop.f32.mrb[30].mxu1  ;;  %v1137_v24 = vpop.f32.mrb[30].mxu0 }
 0x431   :  { %v2084_v3 = vmul.f32 -1.442695, %v1140_v40  ;;  %v1097_v7 = vpop.f32.mrb[31].mxu1  ;;  %v1138_v17 = vpop.f32.mrb[31].mxu0 }
 0x432   :  { %v2085_v22 = vmul.f32 -1.442695, %v1141_v21  ;;  %v2086_v44 = vmul.f32 -1.442695, %v1143_v23 }
 0x433   :  { %2311 = vpow2.f32 %v2084_v3 }
 0x434   :  { %2313 = vpow2.f32 %v2085_v22 }
 0x435   :  { %2315 = vpow2.f32 %v2086_v44 }
 0x436   :  { %2317 = vtanh.f32 %v1142_v12 }
 0x43d   :  { %v2312_v41 = vpop.eup %2311 }
 0x43e   :  { %v2314_v45 = vpop.eup %2313  ;;  %v1147_v28 = vadd.f32 1.0, %v2312_v41 }
 0x43f   :  { %v1153_v36 = vadd.f32 1.0, %v2314_v45  ;;  %v2316_v42 = vpop.eup %2315 }
 0x440   :  { %2319 = vrcp.f32 %v1147_v28  ;;  %v2318_v10 = vpop.eup %2317  ;;  %v1160_v40 = vadd.f32 1.0, %v2316_v42 }
 0x441   :  { %2321 = vrcp.f32 %v1153_v36 }
 0x442   :  { %2323 = vrcp.f32 %v1160_v40 }
 0x44a   :  { %v2320_v43 = vpop.eup %2319 }
 0x44b   :  { %v2322_v31 = vpop.eup %2321  ;;  %v1164_v14 = vmul.f32 %v2320_v43, %v2318_v10 }
 0x44c   :  { %v1163_v15 = vmul.f32 %v2322_v31, %v3097_v6  ;;  %v2324_v21 = vpop.eup %2323 }
 0x44e   :  { %v3143_v18 = vadd.f32 %v1164_v14, %v1163_v15 }
 0x450   :  { %2325 = vtanh.f32 %v3143_v18 }
 0x45a   :  { %v2326_v23 = vpop.eup %2325 }
 0x45b   :  { %v3146_v2 = vmul.f32 %v2326_v23, %v2324_v21 }
 0x45d   :  { %v1173_v12 = vpack.c.bf16 %v3146_v2, %v3146_v2 }
 0x45f   :  { %1207 = vmatmul.mubr.bf16.vlgmr.msra.gmra.mrb[32].mxu1 %v1173_v12  ;;  %1248 = vmatmul.mubr.bf16.vlgmr.msra.gmra.mrb[32].mxu0 %v1173_v12 }
 0x460   :  { %1291 = vmatpush1.bf16.msra.mxu1 %v2774_v25  ;;  %1332 = vmatpush1.bf16.msra.mxu0 %v2779_v26 }
 0x461   :  { %1292 = vmatprep.subr.bf16.mxu1 %v2784_v27  ;;  %1333 = vmatprep.subr.bf16.mxu0 %v2789_v19 }
 0x462   :  { %1322 = vmatprep.mubr.bf16.mxu1 %v3581_v39  ;;  %1363 = vmatprep.mubr.bf16.mxu0 %v3581_v39 }
 0x464   :  { %1293 = vmatpush1.bf16.msra.mxu1 %v2796_v32  ;;  %1334 = vmatpush1.bf16.msra.mxu0 %v2801_v35 }
 0x465   :  { %1294 = vmatprep.subr.bf16.mxu1 %v2808_v37  ;;  %1335 = vmatprep.subr.bf16.mxu0 %v2813_v38 }
 0x468   :  { %1295 = vmatpush1.bf16.msra.mxu1 %v2826_v33  ;;  %1336 = vmatpush1.bf16.msra.mxu0 %v2831_v34 }
 0x469   :  { %1296 = vmatprep.subr.bf16.mxu1 %v2838_v29  ;;  %1337 = vmatprep.subr.bf16.mxu0 %v2843_v30 }
 0x46c   :  { %1297 = vmatpush1.bf16.msra.mxu1 %v2850_v47  ;;  %1338 = vmatpush1.bf16.msra.mxu0 %v2855_v48 }
 0x46d   :  { %1298 = vmatprep.subr.bf16.mxu1 %v2862_v49  ;;  %1339 = vmatprep.subr.bf16.mxu0 %v2867_v50 }
 0x470   :  { %1299 = vmatpush1.bf16.msra.mxu1 %v2876_v51  ;;  %1340 = vmatpush1.bf16.msra.mxu0 %v2881_v52 }
 0x471   :  { %1300 = vmatprep.subr.bf16.mxu1 %v2888_v53  ;;  %1341 = vmatprep.subr.bf16.mxu0 %v2893_v54 }
 0x474   :  { %1301 = vmatpush1.bf16.msra.mxu1 %v2900_v55  ;;  %1342 = vmatpush1.bf16.msra.mxu0 %v2905_v56 }
 0x475   :  { %1302 = vmatprep.subr.bf16.mxu1 %v2912_v57  ;;  %1343 = vmatprep.subr.bf16.mxu0 %v2917_v58 }
 0x478   :  { %1303 = vmatpush1.bf16.msra.mxu1 %v2926_v59  ;;  %1344 = vmatpush1.bf16.msra.mxu0 %v2931_v60 }
 0x479   :  { %1304 = vmatprep.subr.bf16.mxu1 %v2938_v61  ;;  %1345 = vmatprep.subr.bf16.mxu0 %v2943_v62 }
 0x47c   :  { %1305 = vmatpush1.bf16.msra.mxu1 %v2950_v63  ;;  %1346 = vmatpush1.bf16.msra.mxu0 %v2955_v0 }
 0x47d   :  { %1406 = vmatprep.subr.bf16.mxu1 %v2756_v11  ;;  %1447 = vmatprep.subr.bf16.mxu0 %v2762_v13 }
 0x532   :  { %v1208_v6 = vpop.f32.mrb[32].mxu1  ;;  %v1249_v24 = vpop.f32.mrb[32].mxu0 }
 0x533   :  { %v1256_v3 = vadd.f32 %v1208_v6, %v3030_v46  ;;  %v1258_v7 = vadd.f32 %v1249_v24, %v3032_v1  ;;  %v1210_v17 = vpop.f32.mrb[33].mxu1  ;;  %v1251_v22 = vpop.f32.mrb[33].mxu0 }
 0x534   :  { %v1257_v44 = vadd.f32 %v1210_v17, %v3035_v4  ;;  %v1259_v41 = vadd.f32 %v1251_v22, %v3038_v5  ;;  %v1212_v45 = vpop.f32.mrb[34].mxu1  ;;  %v1253_v28 = vpop.f32.mrb[34].mxu0 }
 0x535   :  { %v2087_v36 = vmul.f32 -1.442695, %v1256_v3  ;;  %v1213_v42 = vpop.f32.mrb[35].mxu1  ;;  %v1254_v10 = vpop.f32.mrb[35].mxu0 }
 0x536   :  { %v2088_v43 = vmul.f32 -1.442695, %v1257_v44  ;;  %v2089_v31 = vmul.f32 -1.442695, %v1259_v41 }
 0x537   :  { %2327 = vpow2.f32 %v2087_v36 }
 0x538   :  { %2329 = vpow2.f32 %v2088_v43  ;;  %v3582_v43 = vld [vmem:[#allocation13_spill] sm:$0xff] }
 0x539   :  { %2331 = vpow2.f32 %v2089_v31 }
 0x53a   :  { %2333 = vtanh.f32 %v1258_v7  ;;  %v1865_v7 = vrot.slane %v3146_v2, 7 }
 0x53c   :  { %v1886_v45 = vsel %vm1885_vm2, %v3100_v9, %v1865_v7 }
 0x541   :  { %v2328_v14 = vpop.eup %2327 }
 0x542   :  { %v2330_v40 = vpop.eup %2329  ;;  %v1263_v46 = vadd.f32 1.0, %v2328_v14  ;;  %v3583_v14 = vld [vmem:[#allocation14_spill] sm:$0xff] }
 0x543   :  { %v1269_v1 = vadd.f32 1.0, %v2330_v40  ;;  %v2332_v4 = vpop.eup %2331 }
 0x544   :  { %2335 = vrcp.f32 %v1263_v46  ;;  %v2334_v15 = vpop.eup %2333  ;;  %v1276_v12 = vadd.f32 1.0, %v2332_v4 }
 0x545   :  { %2337 = vrcp.f32 %v1269_v1 }
 0x546   :  { %2339 = vrcp.f32 %v1276_v12 }
 0x54e   :  { %v2336_v5 = vpop.eup %2335 }
 0x54f   :  { %v2338_v21 = vpop.eup %2337  ;;  %v1280_v23 = vmul.f32 %v2336_v5, %v2334_v15 }
 0x550   :  { %v1279_v6 = vmul.f32 %v2338_v21, %v3143_v18  ;;  %v2340_v3 = vpop.eup %2339 }
 0x552   :  { %v3189_v24 = vadd.f32 %v1280_v23, %v1279_v6 }
 0x554   :  { %2341 = vtanh.f32 %v3189_v24 }
 0x55e   :  { %v2342_v17 = vpop.eup %2341 }
 0x55f   :  { %v1283_v22 = vmul.f32 %v2342_v17, %v2340_v3 }
 0x561   :  { %v1289_v44 = vpack.c.bf16 %v1283_v22, %v1283_v22  ;;  %v1868_v41 = vrot.slane %v1283_v22, 6 }
 0x563   :  { %1323 = vmatmul.mubr.bf16.vlgmr.msra.gmra.mrb[36].mxu1 %v1289_v44  ;;  %v3194_v28 = vsel %vm1887_vm3, %v1886_v45, %v1868_v41  ;;  %1364 = vmatmul.mubr.bf16.vlgmr.msra.gmra.mrb[36].mxu0 %v1289_v44 }
 0x564   :  { %1407 = vmatpush1.bf16.msra.mxu1 %v2774_v25  ;;  %1448 = vmatpush1.bf16.msra.mxu0 %v2779_v26 }
 0x565   :  { %1408 = vmatprep.subr.bf16.mxu1 %v2784_v27  ;;  %1449 = vmatprep.subr.bf16.mxu0 %v2789_v19 }
 0x566   :  { %1438 = vmatprep.mubr.bf16.mxu1 %v3581_v39  ;;  %1479 = vmatprep.mubr.bf16.mxu0 %v3581_v39 }
 0x568   :  { %1409 = vmatpush1.bf16.msra.mxu1 %v2796_v32  ;;  %1450 = vmatpush1.bf16.msra.mxu0 %v2801_v35 }
 0x569   :  { %1410 = vmatprep.subr.bf16.mxu1 %v2808_v37  ;;  %1451 = vmatprep.subr.bf16.mxu0 %v2813_v38 }
 0x56c   :  { %1411 = vmatpush1.bf16.msra.mxu1 %v2826_v33  ;;  %1452 = vmatpush1.bf16.msra.mxu0 %v2831_v34 }
 0x56d   :  { %1412 = vmatprep.subr.bf16.mxu1 %v2838_v29  ;;  %1453 = vmatprep.subr.bf16.mxu0 %v2843_v30 }
 0x570   :  { %1413 = vmatpush1.bf16.msra.mxu1 %v2850_v47  ;;  %1454 = vmatpush1.bf16.msra.mxu0 %v2855_v48 }
 0x571   :  { %1414 = vmatprep.subr.bf16.mxu1 %v2862_v49  ;;  %1455 = vmatprep.subr.bf16.mxu0 %v2867_v50 }
 0x574   :  { %1415 = vmatpush1.bf16.msra.mxu1 %v2876_v51  ;;  %1456 = vmatpush1.bf16.msra.mxu0 %v2881_v52 }
 0x575   :  { %1416 = vmatprep.subr.bf16.mxu1 %v2888_v53  ;;  %1457 = vmatprep.subr.bf16.mxu0 %v2893_v54 }
 0x578   :  { %1417 = vmatpush1.bf16.msra.mxu1 %v2900_v55  ;;  %1458 = vmatpush1.bf16.msra.mxu0 %v2905_v56 }
 0x579   :  { %1418 = vmatprep.subr.bf16.mxu1 %v2912_v57  ;;  %1459 = vmatprep.subr.bf16.mxu0 %v2917_v58 }
 0x57c   :  { %1419 = vmatpush1.bf16.msra.mxu1 %v2926_v59  ;;  %1460 = vmatpush1.bf16.msra.mxu0 %v2931_v60 }
 0x57d   :  { %1420 = vmatprep.subr.bf16.mxu1 %v2938_v61  ;;  %1461 = vmatprep.subr.bf16.mxu0 %v2943_v62 }
 0x580   :  { %1421 = vmatpush1.bf16.msra.mxu1 %v2950_v63  ;;  %1462 = vmatpush1.bf16.msra.mxu0 %v2955_v0 }
 0x581   :  { %1522 = vmatprep.subr.bf16.mxu1 %v2756_v11  ;;  %1563 = vmatprep.subr.bf16.mxu0 %v2762_v13 }
 0x636   :  { %v1324_v9 = vpop.f32.mrb[36].mxu1  ;;  %v1365_v18 = vpop.f32.mrb[36].mxu0 }
 0x637   :  { %v1372_v2 = vadd.f32 %v1324_v9, %v3040_v8  ;;  %v1374_v36 = vadd.f32 %v1365_v18, %v3042_v16  ;;  %v1326_v42 = vpop.f32.mrb[37].mxu1  ;;  %v1367_v10 = vpop.f32.mrb[37].mxu0 }
 0x638   :  { %v1373_v31 = vadd.f32 %v1326_v42, %v3582_v43  ;;  %v1375_v40 = vadd.f32 %v1367_v10, %v3583_v14  ;;  %v1328_v46 = vpop.f32.mrb[38].mxu1  ;;  %v1369_v1 = vpop.f32.mrb[38].mxu0 }
 0x639   :  { %v2090_v4 = vmul.f32 -1.442695, %v1372_v2  ;;  %v1329_v15 = vpop.f32.mrb[39].mxu1  ;;  %v1370_v5 = vpop.f32.mrb[39].mxu0 }
 0x63a   :  { %v2091_v11 = vmul.f32 -1.442695, %v1373_v31  ;;  %v2092_v13 = vmul.f32 -1.442695, %v1375_v40 }
 0x63b   :  { %2343 = vpow2.f32 %v2090_v4 }
 0x63c   :  { %2345 = vpow2.f32 %v2091_v11 }
 0x63d   :  { %2347 = vpow2.f32 %v2092_v13  ;;  %v3299_v13 = vld [vmem:[%s3554_s6] ss:$16 sps:$4 sm:$0xff]  }
 0x63e   :  { %2349 = vtanh.f32 %v1374_v36 }
 0x645   :  { %v2344_v21 = vpop.eup %2343 }
 0x646   :  { %v2346_v23 = vpop.eup %2345  ;;  %v1379_v8 = vadd.f32 1.0, %v2344_v21  ;;  %v3305_v21 = vld [vmem:[%s3554_s6 + $0x8] ss:$16 sps:$4 sm:$0xff]  }
 0x647   :  { %v1385_v16 = vadd.f32 1.0, %v2346_v23  ;;  %v2348_v12 = vpop.eup %2347  ;;  %v3311_v23 = vld [vmem:[%s3554_s6 + $0x24] ss:$16 sps:$4 sm:$0xff]  }
 0x648   :  { %2351 = vrcp.f32 %v1379_v8  ;;  %v2350_v6 = vpop.eup %2349  ;;  %v1392_v22 = vadd.f32 1.0, %v2348_v12  ;;  %v3317_v8 = vld [vmem:[%s3554_s6 + $0x2c] ss:$16 sps:$4 sm:$0xff]   ;;  %v3331_v12 = vld [vmem:[%s3554_s6 + $0x28] ss:$16 sps:$4 sm:$0xff]  }
 0x649   :  { %2353 = vrcp.f32 %v1385_v16  ;;  %v3325_v16 = vld [vmem:[%s3554_s6 + $0x20] ss:$16 sps:$4 sm:$0xff]  }
 0x64a   :  { %2355 = vrcp.f32 %v1392_v22  ;;  %v3361_v22 = vld [vmem:[%s3554_s6 + $0x64] ss:$16 sps:$4 sm:$0xff]  }
 0x652   :  { %v2352_v3 = vpop.eup %2351 }
 0x653   :  { %v2354_v17 = vpop.eup %2353  ;;  %v1396_v7 = vmul.f32 %v2352_v3, %v2350_v6  ;;  %v3337_v6 = vld [vmem:[%s3554_s6 + $0x44] ss:$16 sps:$4 sm:$0xff]   ;;  %v3343_v3 = vld [vmem:[%s3554_s6 + $0x4c] ss:$16 sps:$4 sm:$0xff]  }
 0x654   :  { %v1395_v44 = vmul.f32 %v2354_v17, %v3189_v24  ;;  %v2356_v45 = vpop.eup %2355  ;;  %v3349_v17 = vld [vmem:[%s3554_s6 + $0x40] ss:$16 sps:$4 sm:$0xff]  }
 0x656   :  { %v3235_v41 = vadd.f32 %v1396_v7, %v1395_v44  ;;  %v3355_v7 = vld [vmem:[%s3554_s6 + $0x48] ss:$16 sps:$4 sm:$0xff]   ;;  %v3367_v44 = vld [vmem:[%s3554_s6 + $0x6c] ss:$16 sps:$4 sm:$0xff]  }
 0x658   :  { %2357 = vtanh.f32 %v3235_v41 }
 0x662   :  { %v2358_v9 = vpop.eup %2357 }
 0x663   :  { %v1399_v18 = vmul.f32 %v2358_v9, %v2356_v45  ;;  %v3379_v45 = vld [vmem:[%s3554_s6 + $0x68] ss:$16 sps:$4 sm:$0xff]   ;;  %v3385_v9 = vld [vmem:[%s3554_s6 + $0x84] ss:$16 sps:$4 sm:$0xff]  }
 0x665   :  { %v1405_v2 = vpack.c.bf16 %v1399_v18, %v1399_v18  ;;  %v1871_v36 = vrot.slane %v1399_v18, 5  ;;  %v3391_v18 = vld [vmem:[%s3554_s6 + $0x8c] ss:$16 sps:$4 sm:$0xff]  }
 0x667   :  { %1439 = vmatmul.mubr.bf16.vlgmr.msra.gmra.mrb[40].mxu1 %v1405_v2  ;;  %v3239_v42 = vsel %vm1889_vm4, %v3194_v28, %v1871_v36  ;;  %1480 = vmatmul.mubr.bf16.vlgmr.msra.gmra.mrb[40].mxu0 %v1405_v2  ;;  %v3397_v2 = vld [vmem:[%s3554_s6 + $0x80] ss:$16 sps:$4 sm:$0xff]   ;;  %v3403_v36 = vld [vmem:[%s3554_s6 + $0x88] ss:$16 sps:$4 sm:$0xff]  }
 0x668   :  { %1523 = vmatpush1.bf16.msra.mxu1 %v2774_v25  ;;  %1564 = vmatpush1.bf16.msra.mxu0 %v2779_v26  ;;  %v3276_v25 = vld [vmem:[%s3554_s6 + $0x4] ss:$16 sps:$4 sm:$0xff]   ;;  %v3282_v26 = vld [vmem:[%s3554_s6 + $0xc] ss:$16 sps:$4 sm:$0xff]  }
 0x669   :  { %1524 = vmatprep.subr.bf16.mxu1 %v2784_v27  ;;  %1565 = vmatprep.subr.bf16.mxu0 %v2789_v19 }
 0x66a   :  { %1554 = vmatprep.mubr.bf16.mxu1 %v3581_v39  ;;  %1595 = vmatprep.mubr.bf16.mxu0 %v3581_v39 }
 0x66c   :  { %1525 = vmatpush1.bf16.msra.mxu1 %v2796_v32  ;;  %1566 = vmatpush1.bf16.msra.mxu0 %v2801_v35  ;;  %v3584_v32 = vld [vmem:[#allocation15_spill] sm:$0xff] }
 0x66d   :  { %1526 = vmatprep.subr.bf16.mxu1 %v2808_v37  ;;  %1567 = vmatprep.subr.bf16.mxu0 %v2813_v38  ;;  %v3585_v37 = vld [vmem:[#allocation16_spill] sm:$0xff] }
 0x670   :  { %1527 = vmatpush1.bf16.msra.mxu1 %v2826_v33  ;;  %1568 = vmatpush1.bf16.msra.mxu0 %v2831_v34 }
 0x671   :  { %1528 = vmatprep.subr.bf16.mxu1 %v2838_v29  ;;  %1569 = vmatprep.subr.bf16.mxu0 %v2843_v30  ;;  %v3586_v29 = vld [vmem:[#allocation17_spill] sm:$0xff] }
 0x674   :  { %1529 = vmatpush1.bf16.msra.mxu1 %v2850_v47  ;;  %1570 = vmatpush1.bf16.msra.mxu0 %v2855_v48  ;;  %v3587_v47 = vld [vmem:[#allocation18_spill] sm:$0xff] }
 0x675   :  { %1530 = vmatprep.subr.bf16.mxu1 %v2862_v49  ;;  %1571 = vmatprep.subr.bf16.mxu0 %v2867_v50 }
 0x678   :  { %1531 = vmatpush1.bf16.msra.mxu1 %v2876_v51  ;;  %1572 = vmatpush1.bf16.msra.mxu0 %v2881_v52 }
 0x679   :  { %1532 = vmatprep.subr.bf16.mxu1 %v2888_v53  ;;  %1573 = vmatprep.subr.bf16.mxu0 %v2893_v54 }
 0x67c   :  { %1533 = vmatpush1.bf16.msra.mxu1 %v2900_v55  ;;  %1574 = vmatpush1.bf16.msra.mxu0 %v2905_v56 }
 0x67d   :  { %1534 = vmatprep.subr.bf16.mxu1 %v2912_v57  ;;  %1575 = vmatprep.subr.bf16.mxu0 %v2917_v58 }
 0x680   :  { %1535 = vmatpush1.bf16.msra.mxu1 %v2926_v59  ;;  %1576 = vmatpush1.bf16.msra.mxu0 %v2931_v60 }
 0x681   :  { %1536 = vmatprep.subr.bf16.mxu1 %v2938_v61  ;;  %1577 = vmatprep.subr.bf16.mxu0 %v2943_v62 }
 0x684   :  { %1537 = vmatpush1.bf16.msra.mxu1 %v2950_v63  ;;  %1578 = vmatpush1.bf16.msra.mxu0 %v2955_v0 }
 0x685   :  { %1638 = vmatprep.subr.bf16.mxu1 %v3276_v25  ;;  %1679 = vmatprep.subr.bf16.mxu0 %v3282_v26 }
 0x73a   :  { %v1440_v27 = vpop.f32.mrb[40].mxu1  ;;  %v1481_v19 = vpop.f32.mrb[40].mxu0 }
 0x73b   :  { %v1488_v35 = vadd.f32 %v1440_v27, %v3584_v32  ;;  %v1490_v38 = vadd.f32 %v1481_v19, %v3585_v37  ;;  %v1442_v33 = vpop.f32.mrb[41].mxu1  ;;  %v1483_v34 = vpop.f32.mrb[41].mxu0  ;;  %v3415_v27 = vld [vmem:[%s3554_s6 + $0xac] ss:$16 sps:$4 sm:$0xff]   ;;  %v3421_v19 = vld [vmem:[%s3554_s6 + $0xa0] ss:$16 sps:$4 sm:$0xff]  }
 0x73c   :  { %v1489_v30 = vadd.f32 %v1442_v33, %v3586_v29  ;;  %v1491_v48 = vadd.f32 %v1483_v34, %v3587_v47  ;;  %v1444_v49 = vpop.f32.mrb[42].mxu1  ;;  %v1485_v50 = vpop.f32.mrb[42].mxu0  ;;  %v3427_v32 = vld [vmem:[%s3554_s6 + $0xa8] ss:$16 sps:$4 sm:$0xff]   ;;  %v3439_v37 = vld [vmem:[%s3554_s6 + $0xcc] ss:$16 sps:$4 sm:$0xff]  }
 0x73d   :  { %v2093_v51 = vmul.f32 -1.442695, %v1488_v35  ;;  %v1445_v52 = vpop.f32.mrb[43].mxu1  ;;  %v1486_v53 = vpop.f32.mrb[43].mxu0  ;;  %v3433_v35 = vld [vmem:[%s3554_s6 + $0xc4] ss:$16 sps:$4 sm:$0xff]  }
 0x73e   :  { %v2094_v54 = vmul.f32 -1.442695, %v1489_v30  ;;  %v2095_v55 = vmul.f32 -1.442695, %v1491_v48  ;;  %v3451_v33 = vld [vmem:[%s3554_s6 + $0xc8] ss:$16 sps:$4 sm:$0xff]  }
 0x73f   :  { %2359 = vpow2.f32 %v2093_v51  ;;  %v3588_v30 = vld [vmem:[#allocation19_spill] sm:$0xff]  ;;  %v3589_v48 = vld [vmem:[#allocation20_spill] sm:$0xff]  ;;  %v3590_v52 = vld [vmem:[#allocation21_spill] sm:$0xff] }
 0x740   :  { %2361 = vpow2.f32 %v2094_v54  ;;  %v3591_v53 = vld [vmem:[#allocation22_spill] sm:$0xff] }
 0x741   :  { %2363 = vpow2.f32 %v2095_v55 }
 0x742   :  { %2365 = vtanh.f32 %v1490_v38  ;;  %v3445_v38 = vld [vmem:[%s3554_s6 + $0xc0] ss:$16 sps:$4 sm:$0xff]  }
 0x749   :  { %v2360_v56 = vpop.eup %2359 }
 0x74a   :  { %v2362_v57 = vpop.eup %2361  ;;  %v1495_v58 = vadd.f32 1.0, %v2360_v56 }
 0x74b   :  { %v1501_v59 = vadd.f32 1.0, %v2362_v57  ;;  %v2364_v60 = vpop.eup %2363 }
 0x74c   :  { %2367 = vrcp.f32 %v1495_v58  ;;  %v2366_v24 = vpop.eup %2365  ;;  %v1508_v31 = vadd.f32 1.0, %v2364_v60 }
 0x74d   :  { %2369 = vrcp.f32 %v1501_v59 }
 0x74e   :  { %2371 = vrcp.f32 %v1508_v31 }
 0x756   :  { %v2368_v28 = vpop.eup %2367 }
 0x757   :  { %v2370_v10 = vpop.eup %2369  ;;  %v1512_v43 = vmul.f32 %v2368_v28, %v2366_v24 }
 0x758   :  { %v1511_v14 = vmul.f32 %v2370_v10, %v3235_v41  ;;  %v2372_v46 = vpop.eup %2371  ;;  %v3373_v41 = vld [vmem:[%s3554_s6 + $0x60] ss:$16 sps:$4 sm:$0xff]  }
 0x75a   :  { %v3290_v40 = vadd.f32 %v1512_v43, %v1511_v14 }
 0x75c   :  { %2373 = vtanh.f32 %v3290_v40 }
 0x766   :  { %v2374_v1 = vpop.eup %2373 }
 0x767   :  { %v1515_v4 = vmul.f32 %v2374_v1, %v2372_v46 }
 0x769   :  { %v1521_v15 = vpack.c.bf16 %v1515_v4, %v1515_v4  ;;  %v1874_v5 = vrot.slane %v1515_v4, 4 }
 0x76b   :  { %1555 = vmatmul.mubr.bf16.vlgmr.msra.gmra.mrb[44].mxu1 %v1521_v15  ;;  %v3294_v11 = vsel %vm1891_vm5, %v3239_v42, %v1874_v5  ;;  %1596 = vmatmul.mubr.bf16.vlgmr.msra.gmra.mrb[44].mxu0 %v1521_v15  ;;  %v3409_v42 = vld [vmem:[%s3554_s6 + $0xa4] ss:$16 sps:$4 sm:$0xff]  }
 0x76c   :  { %1639 = vmatpush1.bf16.msra.mxu1 %v3299_v13  ;;  %1680 = vmatpush1.bf16.msra.mxu0 %v3305_v21 }
 0x76d   :  { %1640 = vmatprep.subr.bf16.mxu1 %v3311_v23  ;;  %1681 = vmatprep.subr.bf16.mxu0 %v3317_v8 }
 0x76e   :  { %1670 = vmatprep.mubr.bf16.mxu1 %v3581_v39  ;;  %1711 = vmatprep.mubr.bf16.mxu0 %v3581_v39 }
 0x770   :  { %1641 = vmatpush1.bf16.msra.mxu1 %v3325_v16  ;;  %1682 = vmatpush1.bf16.msra.mxu0 %v3331_v12 }
 0x771   :  { %1642 = vmatprep.subr.bf16.mxu1 %v3337_v6  ;;  %1683 = vmatprep.subr.bf16.mxu0 %v3343_v3 }
 0x774   :  { %1643 = vmatpush1.bf16.msra.mxu1 %v3349_v17  ;;  %1684 = vmatpush1.bf16.msra.mxu0 %v3355_v7 }
 0x775   :  { %1644 = vmatprep.subr.bf16.mxu1 %v3361_v22  ;;  %1685 = vmatprep.subr.bf16.mxu0 %v3367_v44 }
 0x778   :  { %1645 = vmatpush1.bf16.msra.mxu1 %v3373_v41  ;;  %1686 = vmatpush1.bf16.msra.mxu0 %v3379_v45 }
 0x779   :  { %1646 = vmatprep.subr.bf16.mxu1 %v3385_v9  ;;  %1687 = vmatprep.subr.bf16.mxu0 %v3391_v18 }
 0x77c   :  { %1647 = vmatpush1.bf16.msra.mxu1 %v3397_v2  ;;  %1688 = vmatpush1.bf16.msra.mxu0 %v3403_v36 }
 0x77d   :  { %1648 = vmatprep.subr.bf16.mxu1 %v3409_v42  ;;  %1689 = vmatprep.subr.bf16.mxu0 %v3415_v27 }
 0x780   :  { %1649 = vmatpush1.bf16.msra.mxu1 %v3421_v19  ;;  %1690 = vmatpush1.bf16.msra.mxu0 %v3427_v32 }
 0x781   :  { %1650 = vmatprep.subr.bf16.mxu1 %v3433_v35  ;;  %1691 = vmatprep.subr.bf16.mxu0 %v3439_v37 }
 0x784   :  { %1651 = vmatpush1.bf16.msra.mxu1 %v3445_v38  ;;  %1692 = vmatpush1.bf16.msra.mxu0 %v3451_v33 }
 0x785   :  { %1652 = vmatprep.subr.bf16.mxu1 %v2938_v61  ;;  %1693 = vmatprep.subr.bf16.mxu0 %v2943_v62 }
 0x788   :  { %1653 = vmatpush1.bf16.msra.mxu1 %v2950_v63  ;;  %1694 = vmatpush1.bf16.msra.mxu0 %v2955_v0 }
 0x789   :  { %1754 = vmatprep.subr.bf16.mxu1 %v3276_v25  ;;  %1795 = vmatprep.subr.bf16.mxu0 %v3282_v26 }
 0x83e   :  { %v1556_v34 = vpop.f32.mrb[44].mxu1  ;;  %v1597_v29 = vpop.f32.mrb[44].mxu0 }
 0x83f   :  { %v1604_v47 = vadd.f32 %v1556_v34, %v3588_v30  ;;  %v1606_v49 = vadd.f32 %v1597_v29, %v3589_v48  ;;  %v1558_v50 = vpop.f32.mrb[45].mxu1  ;;  %v1599_v51 = vpop.f32.mrb[45].mxu0 }
 0x840   :  { %v1605_v61 = vadd.f32 %v1558_v50, %v3590_v52  ;;  %v1607_v62 = vadd.f32 %v1599_v51, %v3591_v53  ;;  %v1560_v54 = vpop.f32.mrb[46].mxu1  ;;  %v1601_v63 = vpop.f32.mrb[46].mxu0 }
 0x841   :  { %v2096_v55 = vmul.f32 -1.442695, %v1604_v47  ;;  %v1561_v0 = vpop.f32.mrb[47].mxu1  ;;  %v1602_v56 = vpop.f32.mrb[47].mxu0 }
 0x842   :  { %v2097_v25 = vmul.f32 -1.442695, %v1605_v61  ;;  %v2098_v26 = vmul.f32 -1.442695, %v1607_v62 }
 0x843   :  { %2375 = vpow2.f32 %v2096_v55 }
 0x844   :  { %2377 = vpow2.f32 %v2097_v25 }
 0x845   :  { %2379 = vpow2.f32 %v2098_v26  ;;  %v3596_v26 = vld [vmem:[#allocation27_spill] sm:$0xff] }
 0x846   :  { %2381 = vtanh.f32 %v1606_v49 }
 0x84d   :  { %v2376_v57 = vpop.eup %2375 }
 0x84e   :  { %v2378_v58 = vpop.eup %2377  ;;  %v1611_v59 = vadd.f32 1.0, %v2376_v57 }
 0x84f   :  { %v1617_v60 = vadd.f32 1.0, %v2378_v58  ;;  %v2380_v24 = vpop.eup %2379 }
 0x850   :  { %2383 = vrcp.f32 %v1611_v59  ;;  %v2382_v28 = vpop.eup %2381  ;;  %v1624_v14 = vadd.f32 1.0, %v2380_v24 }
 0x851   :  { %2385 = vrcp.f32 %v1617_v60  ;;  %v3597_v60 = vld [vmem:[#allocation28_spill] sm:$0xff] }
 0x852   :  { %2387 = vrcp.f32 %v1624_v14 }
 0x85a   :  { %v2384_v10 = vpop.eup %2383 }
 0x85b   :  { %v2386_v43 = vpop.eup %2385  ;;  %v1628_v31 = vmul.f32 %v2384_v10, %v2382_v28  ;;  %v3598_v28 = vld [vmem:[#allocation29_spill] sm:$0xff] }
 0x85c   :  { %v1627_v46 = vmul.f32 %v2386_v43, %v3290_v40  ;;  %v2388_v4 = vpop.eup %2387  ;;  %v2452_v40 = vld [vmem:[%s3554_s6 + $0xec] ss:$16 sps:$4 sm:$0xff]  }
 0x85e   :  { %v3465_v1 = vadd.f32 %v1628_v31, %v1627_v46 }
 0x860   :  { %2389 = vtanh.f32 %v3465_v1 }
 0x86a   :  { %v2390_v15 = vpop.eup %2389 }
 0x86b   :  { %v1631_v5 = vmul.f32 %v2390_v15, %v2388_v4 }
 0x86d   :  { %v1637_v34 = vpack.c.bf16 %v1631_v5, %v1631_v5  ;;  %v1877_v29 = vrot.slane %v1631_v5, 3 }
 0x86f   :  { %1671 = vmatmul.mubr.bf16.vlgmr.msra.gmra.mrb[48].mxu1 %v1637_v34  ;;  %v3469_v30 = vsel %vm1893_vm6, %v3294_v11, %v1877_v29  ;;  %1712 = vmatmul.mubr.bf16.vlgmr.msra.gmra.mrb[48].mxu0 %v1637_v34  ;;  %v2453_v11 = vld [vmem:[%s3554_s6 + $0xe0] ss:$16 sps:$4 sm:$0xff]  }
 0x870   :  { %1755 = vmatpush1.bf16.msra.mxu1 %v3299_v13  ;;  %1796 = vmatpush1.bf16.msra.mxu0 %v3305_v21  ;;  %v2454_v13 = vld [vmem:[%s3554_s6 + $0xe8] ss:$16 sps:$4 sm:$0xff]  }
 0x871   :  { %1756 = vmatprep.subr.bf16.mxu1 %v3311_v23  ;;  %1797 = vmatprep.subr.bf16.mxu0 %v3317_v8  ;;  %v3592_v8 = vld [vmem:[#allocation23_spill] sm:$0xff] }
 0x872   :  { %1786 = vmatprep.mubr.bf16.mxu1 %v3581_v39  ;;  %1827 = vmatprep.mubr.bf16.mxu0 %v3581_v39  ;;  %v2451_v39 = vld [vmem:[%s3554_s6 + $0xe4] ss:$16 sps:$4 sm:$0xff]  }
 0x874   :  { %1757 = vmatpush1.bf16.msra.mxu1 %v3325_v16  ;;  %1798 = vmatpush1.bf16.msra.mxu0 %v3331_v12  ;;  %v3593_v12 = vld [vmem:[#allocation24_spill] sm:$0xff] }
 0x875   :  { %1758 = vmatprep.subr.bf16.mxu1 %v3337_v6  ;;  %1799 = vmatprep.subr.bf16.mxu0 %v3343_v3 }
 0x878   :  { %1759 = vmatpush1.bf16.msra.mxu1 %v3349_v17  ;;  %1800 = vmatpush1.bf16.msra.mxu0 %v3355_v7  ;;  %v3594_v7 = vld [vmem:[#allocation25_spill] sm:$0xff] }
 0x879   :  { %1760 = vmatprep.subr.bf16.mxu1 %v3361_v22  ;;  %1801 = vmatprep.subr.bf16.mxu0 %v3367_v44  ;;  %v3595_v44 = vld [vmem:[#allocation26_spill] sm:$0xff] }
 0x87c   :  { %1761 = vmatpush1.bf16.msra.mxu1 %v3373_v41  ;;  %1802 = vmatpush1.bf16.msra.mxu0 %v3379_v45 }
 0x87d   :  { %1762 = vmatprep.subr.bf16.mxu1 %v3385_v9  ;;  %1803 = vmatprep.subr.bf16.mxu0 %v3391_v18 }
 0x880   :  { %1763 = vmatpush1.bf16.msra.mxu1 %v3397_v2  ;;  %1804 = vmatpush1.bf16.msra.mxu0 %v3403_v36 }
 0x881   :  { %1764 = vmatprep.subr.bf16.mxu1 %v3409_v42  ;;  %1805 = vmatprep.subr.bf16.mxu0 %v3415_v27 }
 0x884   :  { %1765 = vmatpush1.bf16.msra.mxu1 %v3421_v19  ;;  %1806 = vmatpush1.bf16.msra.mxu0 %v3427_v32 }
 0x885   :  { %1766 = vmatprep.subr.bf16.mxu1 %v3433_v35  ;;  %1807 = vmatprep.subr.bf16.mxu0 %v3439_v37 }
 0x888   :  { %1767 = vmatpush1.bf16.msra.mxu1 %v3445_v38  ;;  %1808 = vmatpush1.bf16.msra.mxu0 %v3451_v33 }
 0x889   :  { %1768 = vmatprep.subr.bf16.mxu1 %v2451_v39  ;;  %1809 = vmatprep.subr.bf16.mxu0 %v2452_v40 }
 0x88c   :  { %1769 = vmatpush1.bf16.msra.mxu1 %v2453_v11  ;;  %1810 = vmatpush1.bf16.msra.mxu0 %v2454_v13 }
 0x942   :  { %v1672_v21 = vpop.f32.mrb[48].mxu1  ;;  %v1713_v23 = vpop.f32.mrb[48].mxu0 }
 0x943   :  { %v1720_v16 = vadd.f32 %v1672_v21, %v3592_v8  ;;  %v1722_v6 = vadd.f32 %v1713_v23, %v3593_v12  ;;  %v1674_v3 = vpop.f32.mrb[49].mxu1  ;;  %v1715_v17 = vpop.f32.mrb[49].mxu0 }
 0x944   :  { %v1721_v22 = vadd.f32 %v1674_v3, %v3594_v7  ;;  %v1723_v41 = vadd.f32 %v1715_v17, %v3595_v44  ;;  %v1676_v45 = vpop.f32.mrb[50].mxu1  ;;  %v1717_v9 = vpop.f32.mrb[50].mxu0 }
 0x945   :  { %v2099_v18 = vmul.f32 -1.442695, %v1720_v16  ;;  %v1677_v2 = vpop.f32.mrb[51].mxu1  ;;  %v1718_v36 = vpop.f32.mrb[51].mxu0 }
 0x946   :  { %v2100_v42 = vmul.f32 -1.442695, %v1721_v22  ;;  %v2101_v27 = vmul.f32 -1.442695, %v1723_v41 }
 0x947   :  { %2391 = vpow2.f32 %v2099_v18 }
 0x948   :  { %2393 = vpow2.f32 %v2100_v42 }
 0x949   :  { %2395 = vpow2.f32 %v2101_v27 }
 0x94a   :  { %2397 = vtanh.f32 %v1722_v6 }
 0x951   :  { %v2392_v19 = vpop.eup %2391 }
 0x952   :  { %v2394_v32 = vpop.eup %2393  ;;  %v1727_v35 = vadd.f32 1.0, %v2392_v19 }
 0x953   :  { %v1733_v37 = vadd.f32 1.0, %v2394_v32  ;;  %v2396_v38 = vpop.eup %2395 }
 0x954   :  { %2399 = vrcp.f32 %v1727_v35  ;;  %v2398_v33 = vpop.eup %2397  ;;  %v1740_v50 = vadd.f32 1.0, %v2396_v38 }
 0x955   :  { %2401 = vrcp.f32 %v1733_v37 }
 0x956   :  { %2403 = vrcp.f32 %v1740_v50 }
 0x95e   :  { %v2400_v47 = vpop.eup %2399 }
 0x95f   :  { %v2402_v48 = vpop.eup %2401  ;;  %v1744_v49 = vmul.f32 %v2400_v47, %v2398_v33 }
 0x960   :  { %v1743_v51 = vmul.f32 %v2402_v48, %v3465_v1  ;;  %v2404_v61 = vpop.eup %2403 }
 0x962   :  { %v1745_v52 = vadd.f32 %v1744_v49, %v1743_v51 }
 0x964   :  { %2405 = vtanh.f32 %v1745_v52 }
 0x96e   :  { %v2406_v53 = vpop.eup %2405 }
 0x96f   :  { %v1747_v62 = vmul.f32 %v2406_v53, %v2404_v61 }
 0x971   :  { %v1753_v54 = vpack.c.bf16 %v1747_v62, %v1747_v62  ;;  %v1880_v63 = vrot.slane %v1747_v62, 2 }
 0x973   :  { %1787 = vmatmul.mubr.bf16.vlgmr.msra.gmra.mrb[52].mxu1 %v1753_v54  ;;  %v1896_v55 = vsel %vm1895_vm7, %v3469_v30, %v1880_v63  ;;  %1828 = vmatmul.mubr.bf16.vlgmr.msra.gmra.mrb[52].mxu0 %v1753_v54 }
 0xa46   :  { %v1788_v0 = vpop.f32.mrb[52].mxu1  ;;  %v1829_v56 = vpop.f32.mrb[52].mxu0 }
 0xa47   :  { %v1836_v25 = vadd.f32 %v1788_v0, %v3080_v20  ;;  %v1838_v57 = vadd.f32 %v1829_v56, %v3596_v26  ;;  %v1790_v58 = vpop.f32.mrb[53].mxu1  ;;  %v1831_v59 = vpop.f32.mrb[53].mxu0 }
 0xa48   :  { %v1837_v24 = vadd.f32 %v1790_v58, %v3597_v60  ;;  %v1839_v10 = vadd.f32 %v1831_v59, %v3598_v28  ;;  %v1792_v43 = vpop.f32.mrb[54].mxu1  ;;  %v1833_v31 = vpop.f32.mrb[54].mxu0 }
 0xa49   :  { %v2102_v14 = vmul.f32 -1.442695, %v1836_v25  ;;  %v1793_v46 = vpop.f32.mrb[55].mxu1  ;;  %v1834_v1 = vpop.f32.mrb[55].mxu0 }
 0xa4a   :  { %v2103_v4 = vmul.f32 -1.442695, %v1837_v24  ;;  %v2104_v15 = vmul.f32 -1.442695, %v1839_v10 }
 0xa4b   :  { %2407 = vpow2.f32 %v2102_v14 }
 0xa4c   :  { %2409 = vpow2.f32 %v2103_v4 }
 0xa4d   :  { %2411 = vpow2.f32 %v2104_v15 }
 0xa4e   :  { %2413 = vtanh.f32 %v1838_v57 }
 0xa55   :  { %v2408_v5 = vpop.eup %2407 }
 0xa56   :  { %v2410_v34 = vpop.eup %2409  ;;  %v1843_v20 = vadd.f32 1.0, %v2408_v5 }
 0xa57   :  { %v1849_v29 = vadd.f32 1.0, %v2410_v34  ;;  %v2412_v30 = vpop.eup %2411 }
 0xa58   :  { %2415 = vrcp.f32 %v1843_v20  ;;  %v2414_v39 = vpop.eup %2413  ;;  %v1856_v21 = vadd.f32 1.0, %v2412_v30 }
 0xa59   :  { %2417 = vrcp.f32 %v1849_v29 }
 0xa5a   :  { %2419 = vrcp.f32 %v1856_v21 }
 0xa62   :  { %v2416_v40 = vpop.eup %2415 }
 0xa63   :  { %v2418_v11 = vpop.eup %2417  ;;  %v1860_v13 = vmul.f32 %v2416_v40, %v2414_v39 }
 0xa64   :  { %v1859_v23 = vmul.f32 %v2418_v11, %v1745_v52  ;;  %v2420_v16 = vpop.eup %2419 }
 0xa66   :  { %v1861_v8 = vadd.f32 %v1860_v13, %v1859_v23 }
 0xa68   :  { %2421 = vtanh.f32 %v1861_v8  ;;  %1901 = vst [vmem:[%s3558_s10] sm:$0xff] %v1861_v8 }
 0xa72   :  { %v2422_v12 = vpop.eup %2421 }
 0xa73   :  { %v1863_v6 = vmul.f32 %v2422_v12, %v2420_v16 }
 0xa75   :  { %v1883_v3 = vrot.slane %v1863_v6, 1  ;;  %1900 = vst [vmem:[%s3557_s9] sm:$0xff] %v1863_v6 }
 0xa77   :  { %v1898_v17 = vsel %vm1897_vm8, %v1896_v55, %v1883_v3 }
 0xa78   :  { %1899 = vst [vmem:[#allocation6] sm:$0xff] %v1898_v17 }
 0xa7c   :  { %v1921_v7 = vld [vmem:[%s3557_s9] sm:$0x3] }
 0xa7d   :  { %1922 = vst [vmem:[%s1902_s3] sm:$0x3] %v1921_v7 }
 0xa7e   :  { %1947 = vsyncadd [#allocation4 + $0x1], 32 }
 0xa7f   :  { %2479 = dma.done.wait [#allocation4 + $0x1], 32 }
 0xa80   :  { %2480 = vsyncadd [#allocation4 + $0x1], 4294967264  ;;  %s2484_s7 = smov [#allocation6]  }
 0xa81   :  { %s1957_s30 = sshll.u32 %s2484_s7, 4  ;;  %s1958_s30 = int_to_ptr.vmem [resolvable:$true] %s1957_s30 }
 0xa82   :  { %s2455_s4 = scalar_lea.vmem %s1958_s30, 128  ;;  %p2460_p1 = scmp.lt.s32.totalorder %s1958_s30, %s1958_s30 }
 0xa83   :  { %p2456_p0 = scmp.ne.s32.totalorder %s1958_s30, %s2455_s4  ;;  %p2461_p2 = scmp.lt.s32.totalorder %s2455_s4, %s2455_s4 }
 0xa85   :  { %p2462_p3 = por %p2461_p2, %p2460_p1 }
 0xa87   :  { %p2463_p4 = pnand %p2462_p3, %p2456_p0 }
 0xa89   :  { %2466 = shalt.err (!%p2463_p4)
}
 0xa8a   :  { %s2467_s11 = scalar_lea.hbm %s3556_s8, 128 }
 0xa8b   :  { %p2468_p5 = scmp.ne.s32.totalorder %s3556_s8, %s2467_s11  ;;  %p2471_p6 = scmp.lt.u32.totalorder %s2467_s11, %s3556_s8 }
 0xa8d   :  { %p2473_p7 = pnand %p2471_p6, %p2468_p5 }
 0xa8f   :  { %2476 = shalt.err (!%p2473_p7)
}
 0xa90   :  { %1960 = dma.vmem_to_hbm [thread:$0]  %s1958_s30, 128, %s3556_s8, [#allocation7]  }
 0xa91   :  { %2481 = dma.done.wait [#allocation7], 128  }
 0xa92   :  { %2482 = vsyncadd [#allocation7], 4294967168 }
 0xa93   :  { %1972 = vsyncpa [#allocation7], 1 }
 0xa94   :  { %1973 = vsyncmov [#allocation4] }
 0xa97   :  { %s1974_s15 = vpop.sfrf %1973 }
 0xa98   :  { %p2105_p8 = scmp.ne.s32.totalorder %s1974_s15, 0 }
 0xa9a   :  { %1978 = shalt.err (%p2105_p8)  }
 0xa9b   :  { %1980 = vsyncmov [#allocation4 + $0x1] }
 0xa9e   :  { %s1981_s16 = vpop.sfrf %1980 }
 0xa9f   :  { %p2106_p9 = scmp.ne.s32.totalorder %s1981_s16, 0 }
 0xaa1   :  { %1985 = shalt.err (%p2106_p9)  }

</bundles_post_ra>
